<compile_context>
chip_gen: v6e
topology: v6e:2x2x1
jax: 0.10.0
libtpu: 0.0.40
codegen_flags: <defaults>
</compile_context>

<pallas_src>
import functools
import math

import jax
import jax.numpy as jnp
from jax.experimental import pallas as pl
from jax.experimental.pallas import tpu as pltpu  # noqa: F401  (TPU backend)

NUM_HEADS = 4
LN_EPS = 1e-12


# ----------------------------------------------------------------------------- helpers
def _layer_norm(x, w, b):
    # TF-style LayerNorm (epsilon inside the sqrt), matches the reference LayerNorm.
    u = jnp.mean(x, axis=-1, keepdims=True)
    s = jnp.mean((x - u) ** 2, axis=-1, keepdims=True)
    return w * ((x - u) / jnp.sqrt(s + LN_EPS)) + b


def _whole_spec(a):
    nd = a.ndim
    return pl.BlockSpec(a.shape, lambda *_: (0,) * nd)


# ----------------------------------------------------------------------- fused kernel
def _diffu_kernel(ts_ref, xt_ref, rs_ref, rep_ref, lam_ref,
                  te_w1, te_b1, te_w2, te_b2,
                  ln1w, ln1b, wqkv, bqkv, wo, bo,
                  ln2w, ln2b, wf1, bf1, wf2, bf2,
                  lnfw, lnfb,
                  out_ref, *, B, S, H):
    NH = NUM_HEADS
    d = H // NH
    BS = B * S
    L = ln1w.shape[0]
    gelu_c = math.sqrt(2.0 / math.pi)
    f32 = jnp.float32

    # ---- time-embed MLP (Linear -> SiLU -> Linear), added to x_t -------------
    h = jnp.dot(ts_ref[...], te_w1[...], preferred_element_type=f32) + te_b1[...]
    h = h * (1.0 / (1.0 + jnp.exp(-h)))                       # exact SiLU (parity)
    emb = jnp.dot(h, te_w2[...], preferred_element_type=f32) + te_b2[...]
    xt = xt_ref[...] + emb                                    # [B, H]

    # ---- hidden = rep_item + lambda * x_t  (x_t broadcast over seq rows) -----
    x3 = rep_ref[...] + lam_ref[...] * xt[:, None, :]         # [B, S, H]
    x = x3.reshape(BS, H)                                     # [B*S, H]

    # mask_seq / sqrt(d), 0 for masked QUERY rows -> zero score row -> uniform softmax
    row_scale = rs_ref[...]                                   # [B, S, 1]

    # ---- transformer blocks (static unroll over stacked layer weights) -------
    for l in range(L):
        # sublayer 1: multi-head self-attention over LayerNorm(x), residual add
        xn = _layer_norm(x, ln1w[l], ln1b[l])
        qkv = jnp.dot(xn, wqkv[l], preferred_element_type=f32) + bqkv[l]   # [B*S, 3H]
        qkv3 = qkv.reshape(B, S, 3 * H)
        wo_l = wo[l]                                                       # [H, H]

        attn = None
        for hh in range(NH):
            q_h = qkv3[:, :, hh * d:(hh + 1) * d]                          # [B, S, d]
            k_h = qkv3[:, :, H + hh * d:H + (hh + 1) * d]
            v_h = qkv3[:, :, 2 * H + hh * d:2 * H + (hh + 1) * d]
            # batched over B: scores, row-masked & scaled in one broadcast multiply
            sc = jnp.einsum('bqd,bkd->bqk', q_h, k_h,
                            preferred_element_type=f32) * row_scale        # [B, S, S]
            sc = sc - jnp.max(sc, axis=-1, keepdims=True)
            p = jnp.exp(sc)
            p = p / jnp.sum(p, axis=-1, keepdims=True)                     # exact softmax
            ctx = jnp.einsum('bqk,bkd->bqd', p, v_h,
                             preferred_element_type=f32)                   # [B, S, d]
            # fold head straight into the output projection: sublane-aligned
            # d-row slice of W_o is a free view; accumulate, no concats.
            part = jnp.dot(ctx.reshape(BS, d), wo_l[hh * d:(hh + 1) * d, :],
                           preferred_element_type=f32)                     # [B*S, H]
            attn = part if attn is None else attn + part
        x = x + attn + bo[l]

        # sublayer 2: position-wise FFN (tanh-GELU) over LayerNorm(x), residual add
        xn2 = _layer_norm(x, ln2w[l], ln2b[l])
        hdn = jnp.dot(xn2, wf1[l], preferred_element_type=f32) + bf1[l]
        act = 0.5 * hdn * (1.0 + jnp.tanh(gelu_c * (hdn + 0.044715 * hdn * hdn * hdn)))
        x = x + jnp.dot(act, wf2[l], preferred_element_type=f32) + bf2[l]

    # ---- final LayerNorm (dropout == identity) --------------------------------
    out_ref[...] = _layer_norm(x, lnfw[...], lnfb[...]).reshape(B, S, H)


def _fused_forward(params, ts_emb, x_t, row_scale, rep_item, lam, *, B, S, H):
    p = params
    weights = (p['te_w1'], p['te_b1'], p['te_w2'], p['te_b2'],
               p['ln1_w'], p['ln1_b'], p['w_qkv'], p['b_qkv'], p['w_o'], p['b_o'],
               p['ln2_w'], p['ln2_b'], p['w_f1'], p['b_f1'], p['w_f2'], p['b_f2'],
               p['ln_f_w'], p['ln_f_b'])
    args = (ts_emb, x_t, row_scale, rep_item, lam) + weights
    kernel = functools.partial(_diffu_kernel, B=B, S=S, H=H)
    # Grid-less single invocation: everything fits VMEM at these sizes and
    # v5e/v6e have a single TensorCore, so a grid would be a serial loop with
    # ~0.35 us/step overhead and zero parallelism.  At production sizes: split
    # rows over a "parallel" axis (v7x: 2 TCs) and stream layer weights over an
    # "arbitrary" L axis with an explicit vmem_limit_bytes.
    return pl.pallas_call(
        kernel,
        out_shape=jax.ShapeDtypeStruct((B, S, H), jnp.float32),
        in_specs=[_whole_spec(a) for a in args],
        out_specs=pl.BlockSpec((B, S, H), lambda *_: (0, 0, 0)),
    )(*args)


# ------------------------------------------------------- parameters
def init_params(key, H, num_blocks):
    L = num_blocks
    keys = iter(jax.random.split(key, 2 + 6 * L))

    def dense(din, dout):
        return 0.02 * jax.random.normal(next(keys), (din, dout), jnp.float32)

    zeros = lambda *s: jnp.zeros(s, jnp.float32)
    ones = lambda *s: jnp.ones(s, jnp.float32)

    te_w1 = dense(H, 4 * H)
    te_w2 = dense(4 * H, H)

    w_qkv, w_o, w_f1, w_f2 = [], [], [], []
    for _ in range(L):
        wq, wk, wv = dense(H, H), dense(H, H), dense(H, H)
        w_qkv.append(jnp.concatenate([wq, wk, wv], axis=1))   # fused [H, 3H]
        w_o.append(dense(H, H))
        w_f1.append(dense(H, 4 * H))
        w_f2.append(dense(4 * H, H))

    params = {
        'te_w1': te_w1, 'te_b1': zeros(1, 4 * H),
        'te_w2': te_w2, 'te_b2': zeros(1, H),
        'ln1_w': ones(L, 1, H), 'ln1_b': zeros(L, 1, H),
        'w_qkv': jnp.stack(w_qkv), 'b_qkv': zeros(L, 1, 3 * H),
        'w_o': jnp.stack(w_o), 'b_o': zeros(L, 1, H),
        'ln2_w': ones(L, 1, H), 'ln2_b': zeros(L, 1, H),
        'w_f1': jnp.stack(w_f1), 'b_f1': zeros(L, 1, 4 * H),
        'w_f2': jnp.stack(w_f2), 'b_f2': zeros(L, 1, H),
        'ln_f_w': ones(1, H), 'ln_f_b': zeros(1, H),
    }
    return params
    # NOTE: linear_item / linear_xt / linear_t / fuse_linear exist in __init__
    # but are unused in Diffu_xstart.forward, so they are omitted.


# ------------------------------------------------------- full forward
def diffu_xstart_forward(params, rep_item, x_t, t, mask_seq, *,
                         lambda_uncertainty, noise_key):
    B, S, H = rep_item.shape
    d = H // NUM_HEADS

    # sinusoidal timestep embedding (glue, cheap; H is even here)
    half = H // 2
    freqs = jnp.exp(-math.log(10000.0) * jnp.arange(half, dtype=jnp.float32) / half)
    targs = t.astype(jnp.float32)[:, None] * freqs[None, :]
    ts_emb = jnp.concatenate([jnp.cos(targs), jnp.sin(targs)], axis=-1)      # [B, H]

    # lambda_uncertainty ~ Normal(mean=lambda, std=lambda), elementwise (glue)
    lam = lambda_uncertainty + lambda_uncertainty * jax.random.normal(
        noise_key, (B, S, H), jnp.float32)

    # Query-row mask folded with the 1/sqrt(d) attention scale:
    #   unmasked row -> scores/sqrt(d);  masked row -> all-zero scores -> uniform
    # softmax, exactly matching the reference masked_fill(-1e9) on query rows.
    row_scale = (mask_seq.astype(jnp.float32) / math.sqrt(d)).reshape(B, S, 1)

    rep_diffu = _fused_forward(params, ts_emb, x_t, row_scale, rep_item, lam,
                               B=B, S=S, H=H)
    out = rep_diffu[:, -1, :]
    return out, rep_diffu


if __name__ == "__main__":
    B, S, H = 2, 8, 32
    NUM_BLOCKS = 2
    LAMBDA_UNC = 0.001

    key = jax.random.PRNGKey(0)
    kp, kr, kx, kt, kn = jax.random.split(key, 5)

    params = init_params(kp, H, NUM_BLOCKS)
    rep_item = jax.random.normal(kr, (B, S, H), jnp.float32)
    x_t = jax.random.normal(kx, (B, H), jnp.float32)
    t = jax.random.randint(kt, (B,), 0, 1000).astype(jnp.float32)
    mask_seq = jnp.ones((B, S), jnp.float32).at[:, 0].set(0.0)

    out, rep_diffu = diffu_xstart_forward(
        params, rep_item, x_t, t, mask_seq,
        lambda_uncertainty=LAMBDA_UNC, noise_key=kn)
    jax.block_until_ready((out, rep_diffu))

    assert out.shape == (B, H) and rep_diffu.shape == (B, S, H)
    assert bool(jnp.all(jnp.isfinite(out))) and bool(jnp.all(jnp.isfinite(rep_diffu)))
    print("KERNEL_OK")
</pallas_src>

<mosaic_0001>
module attributes {stable_mosaic.version = 11 : i64} {
  func.func @_diffu_kernel(%arg0: memref<2x32xf32, #tpu.memory_space<vmem>>, %arg1: memref<2x32xf32, #tpu.memory_space<vmem>>, %arg2: memref<2x8x1xf32, #tpu.memory_space<vmem>>, %arg3: memref<2x8x32xf32, #tpu.memory_space<vmem>>, %arg4: memref<2x8x32xf32, #tpu.memory_space<vmem>>, %arg5: memref<32x128xf32, #tpu.memory_space<vmem>>, %arg6: memref<1x128xf32, #tpu.memory_space<vmem>>, %arg7: memref<128x32xf32, #tpu.memory_space<vmem>>, %arg8: memref<1x32xf32, #tpu.memory_space<vmem>>, %arg9: memref<2x1x32xf32, #tpu.memory_space<vmem>>, %arg10: memref<2x1x32xf32, #tpu.memory_space<vmem>>, %arg11: memref<2x32x96xf32, #tpu.memory_space<vmem>>, %arg12: memref<2x1x96xf32, #tpu.memory_space<vmem>>, %arg13: memref<2x32x32xf32, #tpu.memory_space<vmem>>, %arg14: memref<2x1x32xf32, #tpu.memory_space<vmem>>, %arg15: memref<2x1x32xf32, #tpu.memory_space<vmem>>, %arg16: memref<2x1x32xf32, #tpu.memory_space<vmem>>, %arg17: memref<2x32x128xf32, #tpu.memory_space<vmem>>, %arg18: memref<2x1x128xf32, #tpu.memory_space<vmem>>, %arg19: memref<2x128x32xf32, #tpu.memory_space<vmem>>, %arg20: memref<2x1x32xf32, #tpu.memory_space<vmem>>, %arg21: memref<1x32xf32, #tpu.memory_space<vmem>>, %arg22: memref<1x32xf32, #tpu.memory_space<vmem>>, %arg23: memref<2x8x32xf32, #tpu.memory_space<vmem>>) attributes {dimension_semantics = [], scalar_prefetch = 0 : i64, scratch_operands = 0 : i64, tpu.core_type = #tpu.core_type<tc>} {
    %c0 = arith.constant 0 : index
    %c0_0 = arith.constant 0 : index
    %0 = vector.load %arg0[%c0, %c0_0] : memref<2x32xf32, #tpu.memory_space<vmem>>, vector<2x32xf32>
    %c0_1 = arith.constant 0 : index
    %c0_2 = arith.constant 0 : index
    %1 = vector.load %arg5[%c0_1, %c0_2] : memref<32x128xf32, #tpu.memory_space<vmem>>, vector<32x128xf32>
    %cst = arith.constant dense<0.000000e+00> : vector<2x128xf32>
    %2 = tpu.matmul %0, %1, %cst {dimension_numbers = #tpu.dot_dimension_numbers<[1], [0], [0], [1], [0, 0, 1, 1], [], []>} : vector<2x32xf32>, vector<32x128xf32>, vector<2x128xf32> -> vector<2x128xf32>
    %c0_3 = arith.constant 0 : index
    %c0_4 = arith.constant 0 : index
    %3 = vector.load %arg6[%c0_3, %c0_4] : memref<1x128xf32, #tpu.memory_space<vmem>>, vector<1x128xf32>
    %4 = vector.broadcast %3 : vector<1x128xf32> to vector<2x128xf32>
    %5 = arith.addf %2, %4 : vector<2x128xf32>
    %cst_5 = arith.constant 0.000000e+00 : f32
    %6 = vector.broadcast %cst_5 : f32 to vector<2x128xf32>
    %7 = arith.subf %6, %5 : vector<2x128xf32>
    %8 = math.exp %7 : vector<2x128xf32>
    %cst_6 = arith.constant 1.000000e+00 : f32
    %9 = vector.broadcast %cst_6 : f32 to vector<2x128xf32>
    %10 = arith.addf %9, %8 : vector<2x128xf32>
    %cst_7 = arith.constant 1.000000e+00 : f32
    %11 = vector.broadcast %cst_7 : f32 to vector<2x128xf32>
    %12 = arith.divf %11, %10 : vector<2x128xf32>
    %13 = arith.mulf %5, %12 : vector<2x128xf32>
    %c0_8 = arith.constant 0 : index
    %c0_9 = arith.constant 0 : index
    %14 = vector.load %arg7[%c0_8, %c0_9] : memref<128x32xf32, #tpu.memory_space<vmem>>, vector<128x32xf32>
    %cst_10 = arith.constant dense<0.000000e+00> : vector<2x32xf32>
    %15 = tpu.matmul %13, %14, %cst_10 {dimension_numbers = #tpu.dot_dimension_numbers<[1], [0], [0], [1], [0, 0, 1, 1], [], []>} : vector<2x128xf32>, vector<128x32xf32>, vector<2x32xf32> -> vector<2x32xf32>
    %c0_11 = arith.constant 0 : index
    %c0_12 = arith.constant 0 : index
    %16 = vector.load %arg8[%c0_11, %c0_12] : memref<1x32xf32, #tpu.memory_space<vmem>>, vector<1x32xf32>
    %17 = vector.broadcast %16 : vector<1x32xf32> to vector<2x32xf32>
    %18 = arith.addf %15, %17 : vector<2x32xf32>
    %c0_13 = arith.constant 0 : index
    %c0_14 = arith.constant 0 : index
    %19 = vector.load %arg1[%c0_13, %c0_14] : memref<2x32xf32, #tpu.memory_space<vmem>>, vector<2x32xf32>
    %20 = arith.addf %19, %18 : vector<2x32xf32>
    %c0_15 = arith.constant 0 : index
    %c0_16 = arith.constant 0 : index
    %c0_17 = arith.constant 0 : index
    %21 = vector.load %arg3[%c0_15, %c0_16, %c0_17] : memref<2x8x32xf32, #tpu.memory_space<vmem>>, vector<2x8x32xf32>
    %c0_18 = arith.constant 0 : index
    %c0_19 = arith.constant 0 : index
    %c0_20 = arith.constant 0 : index
    %22 = vector.load %arg4[%c0_18, %c0_19, %c0_20] : memref<2x8x32xf32, #tpu.memory_space<vmem>>, vector<2x8x32xf32>
    %23 = vector.shape_cast %20 : vector<2x32xf32> to vector<2x1x32xf32>
    %24 = vector.broadcast %23 : vector<2x1x32xf32> to vector<2x8x32xf32>
    %25 = arith.mulf %22, %24 : vector<2x8x32xf32>
    %26 = arith.addf %21, %25 : vector<2x8x32xf32>
    %27 = vector.shape_cast %26 : vector<2x8x32xf32> to vector<16x32xf32>
    %c0_21 = arith.constant 0 : index
    %c0_22 = arith.constant 0 : index
    %c0_23 = arith.constant 0 : index
    %28 = vector.load %arg2[%c0_21, %c0_22, %c0_23] : memref<2x8x1xf32, #tpu.memory_space<vmem>>, vector<2x8x1xf32>
    %c0_24 = arith.constant 0 : index
    %c0_25 = arith.constant 0 : index
    %c0_26 = arith.constant 0 : index
    %29 = vector.load %arg9[%c0_24, %c0_25, %c0_26] : memref<2x1x32xf32, #tpu.memory_space<vmem>>, vector<1x1x32xf32>
    %30 = vector.shape_cast %29 : vector<1x1x32xf32> to vector<1x32xf32>
    %c0_27 = arith.constant 0 : index
    %c0_28 = arith.constant 0 : index
    %c0_29 = arith.constant 0 : index
    %31 = vector.load %arg10[%c0_27, %c0_28, %c0_29] : memref<2x1x32xf32, #tpu.memory_space<vmem>>, vector<1x1x32xf32>
    %32 = vector.shape_cast %31 : vector<1x1x32xf32> to vector<1x32xf32>
    %cst_30 = arith.constant dense<0.000000e+00> : vector<16xf32>
    %33 = vector.multi_reduction <add>, %27, %cst_30 [1] : vector<16x32xf32> to vector<16xf32>
    %34 = vector.shape_cast %33 : vector<16xf32> to vector<16x1xf32>
    %cst_31 = arith.constant 3.200000e+01 : f32
    %35 = vector.broadcast %cst_31 : f32 to vector<16x1xf32>
    %36 = arith.divf %34, %35 : vector<16x1xf32>
    %37 = vector.broadcast %36 : vector<16x1xf32> to vector<16x32xf32>
    %38 = arith.subf %27, %37 : vector<16x32xf32>
    %39 = arith.mulf %38, %38 : vector<16x32xf32>
    %cst_32 = arith.constant dense<0.000000e+00> : vector<16xf32>
    %40 = vector.multi_reduction <add>, %39, %cst_32 [1] : vector<16x32xf32> to vector<16xf32>
    %41 = vector.shape_cast %40 : vector<16xf32> to vector<16x1xf32>
    %cst_33 = arith.constant 3.200000e+01 : f32
    %42 = vector.broadcast %cst_33 : f32 to vector<16x1xf32>
    %43 = arith.divf %41, %42 : vector<16x1xf32>
    %44 = vector.broadcast %36 : vector<16x1xf32> to vector<16x32xf32>
    %45 = arith.subf %27, %44 : vector<16x32xf32>
    %cst_34 = arith.constant 9.99999996E-13 : f32
    %46 = vector.broadcast %cst_34 : f32 to vector<16x1xf32>
    %47 = arith.addf %43, %46 : vector<16x1xf32>
    %48 = math.sqrt %47 : vector<16x1xf32>
    %49 = vector.broadcast %48 : vector<16x1xf32> to vector<16x32xf32>
    %50 = arith.divf %45, %49 : vector<16x32xf32>
    %51 = vector.broadcast %30 : vector<1x32xf32> to vector<16x32xf32>
    %52 = arith.mulf %51, %50 : vector<16x32xf32>
    %53 = vector.broadcast %32 : vector<1x32xf32> to vector<16x32xf32>
    %54 = arith.addf %52, %53 : vector<16x32xf32>
    %c0_35 = arith.constant 0 : index
    %c0_36 = arith.constant 0 : index
    %c0_37 = arith.constant 0 : index
    %55 = vector.load %arg11[%c0_35, %c0_36, %c0_37] : memref<2x32x96xf32, #tpu.memory_space<vmem>>, vector<1x32x96xf32>
    %56 = vector.shape_cast %55 : vector<1x32x96xf32> to vector<32x96xf32>
    %cst_38 = arith.constant dense<0.000000e+00> : vector<16x96xf32>
    %57 = tpu.matmul %54, %56, %cst_38 {dimension_numbers = #tpu.dot_dimension_numbers<[1], [0], [0], [1], [0, 0, 1, 1], [], []>} : vector<16x32xf32>, vector<32x96xf32>, vector<16x96xf32> -> vector<16x96xf32>
    %c0_39 = arith.constant 0 : index
    %c0_40 = arith.constant 0 : index
    %c0_41 = arith.constant 0 : index
    %58 = vector.load %arg12[%c0_39, %c0_40, %c0_41] : memref<2x1x96xf32, #tpu.memory_space<vmem>>, vector<1x1x96xf32>
    %59 = vector.shape_cast %58 : vector<1x1x96xf32> to vector<1x96xf32>
    %60 = vector.broadcast %59 : vector<1x96xf32> to vector<16x96xf32>
    %61 = arith.addf %57, %60 : vector<16x96xf32>
    %62 = vector.shape_cast %61 : vector<16x96xf32> to vector<2x8x96xf32>
    %c0_42 = arith.constant 0 : index
    %c0_43 = arith.constant 0 : index
    %c0_44 = arith.constant 0 : index
    %63 = vector.load %arg13[%c0_42, %c0_43, %c0_44] : memref<2x32x32xf32, #tpu.memory_space<vmem>>, vector<1x32x32xf32>
    %64 = vector.shape_cast %63 : vector<1x32x32xf32> to vector<32x32xf32>
    %65 = vector.extract_strided_slice %62 {offsets = [0, 0, 0], sizes = [2, 8, 8], strides = [1, 1, 1]} : vector<2x8x96xf32> to vector<2x8x8xf32>
    %66 = vector.extract_strided_slice %62 {offsets = [0, 0, 32], sizes = [2, 8, 8], strides = [1, 1, 1]} : vector<2x8x96xf32> to vector<2x8x8xf32>
    %67 = vector.extract_strided_slice %62 {offsets = [0, 0, 64], sizes = [2, 8, 8], strides = [1, 1, 1]} : vector<2x8x96xf32> to vector<2x8x8xf32>
    "tpu.trace_start"() <{level = 10 : i32, message = "bqd,bkd->bqk"}> : () -> ()
    %cst_45 = arith.constant dense<0.000000e+00> : vector<2x8x8xf32>
    %68 = tpu.matmul %65, %66, %cst_45 {dimension_numbers = #tpu.dot_dimension_numbers<[2], [2], [1], [1], [0, 0, 0, 1, 1, 1], [0], [0]>} : vector<2x8x8xf32>, vector<2x8x8xf32>, vector<2x8x8xf32> -> vector<2x8x8xf32>
    "tpu.trace_stop"() : () -> ()
    %69 = vector.broadcast %28 : vector<2x8x1xf32> to vector<2x8x8xf32>
    %70 = arith.mulf %68, %69 : vector<2x8x8xf32>
    %cst_46 = arith.constant dense<0xFF800000> : vector<2x8xf32>
    %71 = vector.multi_reduction <maximumf>, %70, %cst_46 [2] : vector<2x8x8xf32> to vector<2x8xf32>
    %72 = vector.shape_cast %71 : vector<2x8xf32> to vector<2x8x1xf32>
    %73 = vector.broadcast %72 : vector<2x8x1xf32> to vector<2x8x8xf32>
    %74 = arith.subf %70, %73 : vector<2x8x8xf32>
    %75 = math.exp %74 : vector<2x8x8xf32>
    %cst_47 = arith.constant dense<0.000000e+00> : vector<2x8xf32>
    %76 = vector.multi_reduction <add>, %75, %cst_47 [2] : vector<2x8x8xf32> to vector<2x8xf32>
    %77 = vector.shape_cast %76 : vector<2x8xf32> to vector<2x8x1xf32>
    %78 = vector.broadcast %77 : vector<2x8x1xf32> to vector<2x8x8xf32>
    %79 = arith.divf %75, %78 : vector<2x8x8xf32>
    "tpu.trace_start"() <{level = 10 : i32, message = "bqk,bkd->bqd"}> : () -> ()
    %cst_48 = arith.constant dense<0.000000e+00> : vector<2x8x8xf32>
    %80 = tpu.matmul %79, %67, %cst_48 {dimension_numbers = #tpu.dot_dimension_numbers<[2], [1], [1], [2], [0, 0, 0, 1, 1, 2], [0], [0]>} : vector<2x8x8xf32>, vector<2x8x8xf32>, vector<2x8x8xf32> -> vector<2x8x8xf32>
    "tpu.trace_stop"() : () -> ()
    %81 = vector.shape_cast %80 : vector<2x8x8xf32> to vector<16x8xf32>
    %82 = vector.extract_strided_slice %64 {offsets = [0, 0], sizes = [8, 32], strides = [1, 1]} : vector<32x32xf32> to vector<8x32xf32>
    %cst_49 = arith.constant dense<0.000000e+00> : vector<16x32xf32>
    %83 = tpu.matmul %81, %82, %cst_49 {dimension_numbers = #tpu.dot_dimension_numbers<[1], [0], [0], [1], [0, 0, 1, 1], [], []>} : vector<16x8xf32>, vector<8x32xf32>, vector<16x32xf32> -> vector<16x32xf32>
    %84 = vector.extract_strided_slice %62 {offsets = [0, 0, 8], sizes = [2, 8, 8], strides = [1, 1, 1]} : vector<2x8x96xf32> to vector<2x8x8xf32>
    %85 = vector.extract_strided_slice %62 {offsets = [0, 0, 40], sizes = [2, 8, 8], strides = [1, 1, 1]} : vector<2x8x96xf32> to vector<2x8x8xf32>
    %86 = vector.extract_strided_slice %62 {offsets = [0, 0, 72], sizes = [2, 8, 8], strides = [1, 1, 1]} : vector<2x8x96xf32> to vector<2x8x8xf32>
    "tpu.trace_start"() <{level = 10 : i32, message = "bqd,bkd->bqk"}> : () -> ()
    %cst_50 = arith.constant dense<0.000000e+00> : vector<2x8x8xf32>
    %87 = tpu.matmul %84, %85, %cst_50 {dimension_numbers = #tpu.dot_dimension_numbers<[2], [2], [1], [1], [0, 0, 0, 1, 1, 1], [0], [0]>} : vector<2x8x8xf32>, vector<2x8x8xf32>, vector<2x8x8xf32> -> vector<2x8x8xf32>
    "tpu.trace_stop"() : () -> ()
    %88 = vector.broadcast %28 : vector<2x8x1xf32> to vector<2x8x8xf32>
    %89 = arith.mulf %87, %88 : vector<2x8x8xf32>
    %cst_51 = arith.constant dense<0xFF800000> : vector<2x8xf32>
    %90 = vector.multi_reduction <maximumf>, %89, %cst_51 [2] : vector<2x8x8xf32> to vector<2x8xf32>
    %91 = vector.shape_cast %90 : vector<2x8xf32> to vector<2x8x1xf32>
    %92 = vector.broadcast %91 : vector<2x8x1xf32> to vector<2x8x8xf32>
    %93 = arith.subf %89, %92 : vector<2x8x8xf32>
    %94 = math.exp %93 : vector<2x8x8xf32>
    %cst_52 = arith.constant dense<0.000000e+00> : vector<2x8xf32>
    %95 = vector.multi_reduction <add>, %94, %cst_52 [2] : vector<2x8x8xf32> to vector<2x8xf32>
    %96 = vector.shape_cast %95 : vector<2x8xf32> to vector<2x8x1xf32>
    %97 = vector.broadcast %96 : vector<2x8x1xf32> to vector<2x8x8xf32>
    %98 = arith.divf %94, %97 : vector<2x8x8xf32>
    "tpu.trace_start"() <{level = 10 : i32, message = "bqk,bkd->bqd"}> : () -> ()
    %cst_53 = arith.constant dense<0.000000e+00> : vector<2x8x8xf32>
    %99 = tpu.matmul %98, %86, %cst_53 {dimension_numbers = #tpu.dot_dimension_numbers<[2], [1], [1], [2], [0, 0, 0, 1, 1, 2], [0], [0]>} : vector<2x8x8xf32>, vector<2x8x8xf32>, vector<2x8x8xf32> -> vector<2x8x8xf32>
    "tpu.trace_stop"() : () -> ()
    %100 = vector.shape_cast %99 : vector<2x8x8xf32> to vector<16x8xf32>
    %101 = vector.extract_strided_slice %64 {offsets = [8, 0], sizes = [8, 32], strides = [1, 1]} : vector<32x32xf32> to vector<8x32xf32>
    %cst_54 = arith.constant dense<0.000000e+00> : vector<16x32xf32>
    %102 = tpu.matmul %100, %101, %cst_54 {dimension_numbers = #tpu.dot_dimension_numbers<[1], [0], [0], [1], [0, 0, 1, 1], [], []>} : vector<16x8xf32>, vector<8x32xf32>, vector<16x32xf32> -> vector<16x32xf32>
    %103 = arith.addf %83, %102 : vector<16x32xf32>
    %104 = vector.extract_strided_slice %62 {offsets = [0, 0, 16], sizes = [2, 8, 8], strides = [1, 1, 1]} : vector<2x8x96xf32> to vector<2x8x8xf32>
    %105 = vector.extract_strided_slice %62 {offsets = [0, 0, 48], sizes = [2, 8, 8], strides = [1, 1, 1]} : vector<2x8x96xf32> to vector<2x8x8xf32>
    %106 = vector.extract_strided_slice %62 {offsets = [0, 0, 80], sizes = [2, 8, 8], strides = [1, 1, 1]} : vector<2x8x96xf32> to vector<2x8x8xf32>
    "tpu.trace_start"() <{level = 10 : i32, message = "bqd,bkd->bqk"}> : () -> ()
    %cst_55 = arith.constant dense<0.000000e+00> : vector<2x8x8xf32>
    %107 = tpu.matmul %104, %105, %cst_55 {dimension_numbers = #tpu.dot_dimension_numbers<[2], [2], [1], [1], [0, 0, 0, 1, 1, 1], [0], [0]>} : vector<2x8x8xf32>, vector<2x8x8xf32>, vector<2x8x8xf32> -> vector<2x8x8xf32>
    "tpu.trace_stop"() : () -> ()
    %108 = vector.broadcast %28 : vector<2x8x1xf32> to vector<2x8x8xf32>
    %109 = arith.mulf %107, %108 : vector<2x8x8xf32>
    %cst_56 = arith.constant dense<0xFF800000> : vector<2x8xf32>
    %110 = vector.multi_reduction <maximumf>, %109, %cst_56 [2] : vector<2x8x8xf32> to vector<2x8xf32>
    %111 = vector.shape_cast %110 : vector<2x8xf32> to vector<2x8x1xf32>
    %112 = vector.broadcast %111 : vector<2x8x1xf32> to vector<2x8x8xf32>
    %113 = arith.subf %109, %112 : vector<2x8x8xf32>
    %114 = math.exp %113 : vector<2x8x8xf32>
    %cst_57 = arith.constant dense<0.000000e+00> : vector<2x8xf32>
    %115 = vector.multi_reduction <add>, %114, %cst_57 [2] : vector<2x8x8xf32> to vector<2x8xf32>
    %116 = vector.shape_cast %115 : vector<2x8xf32> to vector<2x8x1xf32>
    %117 = vector.broadcast %116 : vector<2x8x1xf32> to vector<2x8x8xf32>
    %118 = arith.divf %114, %117 : vector<2x8x8xf32>
    "tpu.trace_start"() <{level = 10 : i32, message = "bqk,bkd->bqd"}> : () -> ()
    %cst_58 = arith.constant dense<0.000000e+00> : vector<2x8x8xf32>
    %119 = tpu.matmul %118, %106, %cst_58 {dimension_numbers = #tpu.dot_dimension_numbers<[2], [1], [1], [2], [0, 0, 0, 1, 1, 2], [0], [0]>} : vector<2x8x8xf32>, vector<2x8x8xf32>, vector<2x8x8xf32> -> vector<2x8x8xf32>
    "tpu.trace_stop"() : () -> ()
    %120 = vector.shape_cast %119 : vector<2x8x8xf32> to vector<16x8xf32>
    %121 = vector.extract_strided_slice %64 {offsets = [16, 0], sizes = [8, 32], strides = [1, 1]} : vector<32x32xf32> to vector<8x32xf32>
    %cst_59 = arith.constant dense<0.000000e+00> : vector<16x32xf32>
    %122 = tpu.matmul %120, %121, %cst_59 {dimension_numbers = #tpu.dot_dimension_numbers<[1], [0], [0], [1], [0, 0, 1, 1], [], []>} : vector<16x8xf32>, vector<8x32xf32>, vector<16x32xf32> -> vector<16x32xf32>
    %123 = arith.addf %103, %122 : vector<16x32xf32>
    %124 = vector.extract_strided_slice %62 {offsets = [0, 0, 24], sizes = [2, 8, 8], strides = [1, 1, 1]} : vector<2x8x96xf32> to vector<2x8x8xf32>
    %125 = vector.extract_strided_slice %62 {offsets = [0, 0, 56], sizes = [2, 8, 8], strides = [1, 1, 1]} : vector<2x8x96xf32> to vector<2x8x8xf32>
    %126 = vector.extract_strided_slice %62 {offsets = [0, 0, 88], sizes = [2, 8, 8], strides = [1, 1, 1]} : vector<2x8x96xf32> to vector<2x8x8xf32>
    "tpu.trace_start"() <{level = 10 : i32, message = "bqd,bkd->bqk"}> : () -> ()
    %cst_60 = arith.constant dense<0.000000e+00> : vector<2x8x8xf32>
    %127 = tpu.matmul %124, %125, %cst_60 {dimension_numbers = #tpu.dot_dimension_numbers<[2], [2], [1], [1], [0, 0, 0, 1, 1, 1], [0], [0]>} : vector<2x8x8xf32>, vector<2x8x8xf32>, vector<2x8x8xf32> -> vector<2x8x8xf32>
    "tpu.trace_stop"() : () -> ()
    %128 = vector.broadcast %28 : vector<2x8x1xf32> to vector<2x8x8xf32>
    %129 = arith.mulf %127, %128 : vector<2x8x8xf32>
    %cst_61 = arith.constant dense<0xFF800000> : vector<2x8xf32>
    %130 = vector.multi_reduction <maximumf>, %129, %cst_61 [2] : vector<2x8x8xf32> to vector<2x8xf32>
    %131 = vector.shape_cast %130 : vector<2x8xf32> to vector<2x8x1xf32>
    %132 = vector.broadcast %131 : vector<2x8x1xf32> to vector<2x8x8xf32>
    %133 = arith.subf %129, %132 : vector<2x8x8xf32>
    %134 = math.exp %133 : vector<2x8x8xf32>
    %cst_62 = arith.constant dense<0.000000e+00> : vector<2x8xf32>
    %135 = vector.multi_reduction <add>, %134, %cst_62 [2] : vector<2x8x8xf32> to vector<2x8xf32>
    %136 = vector.shape_cast %135 : vector<2x8xf32> to vector<2x8x1xf32>
    %137 = vector.broadcast %136 : vector<2x8x1xf32> to vector<2x8x8xf32>
    %138 = arith.divf %134, %137 : vector<2x8x8xf32>
    "tpu.trace_start"() <{level = 10 : i32, message = "bqk,bkd->bqd"}> : () -> ()
    %cst_63 = arith.constant dense<0.000000e+00> : vector<2x8x8xf32>
    %139 = tpu.matmul %138, %126, %cst_63 {dimension_numbers = #tpu.dot_dimension_numbers<[2], [1], [1], [2], [0, 0, 0, 1, 1, 2], [0], [0]>} : vector<2x8x8xf32>, vector<2x8x8xf32>, vector<2x8x8xf32> -> vector<2x8x8xf32>
    "tpu.trace_stop"() : () -> ()
    %140 = vector.shape_cast %139 : vector<2x8x8xf32> to vector<16x8xf32>
    %141 = vector.extract_strided_slice %64 {offsets = [24, 0], sizes = [8, 32], strides = [1, 1]} : vector<32x32xf32> to vector<8x32xf32>
    %cst_64 = arith.constant dense<0.000000e+00> : vector<16x32xf32>
    %142 = tpu.matmul %140, %141, %cst_64 {dimension_numbers = #tpu.dot_dimension_numbers<[1], [0], [0], [1], [0, 0, 1, 1], [], []>} : vector<16x8xf32>, vector<8x32xf32>, vector<16x32xf32> -> vector<16x32xf32>
    %143 = arith.addf %123, %142 : vector<16x32xf32>
    %144 = arith.addf %27, %143 : vector<16x32xf32>
    %c0_65 = arith.constant 0 : index
    %c0_66 = arith.constant 0 : index
    %c0_67 = arith.constant 0 : index
    %145 = vector.load %arg14[%c0_65, %c0_66, %c0_67] : memref<2x1x32xf32, #tpu.memory_space<vmem>>, vector<1x1x32xf32>
    %146 = vector.shape_cast %145 : vector<1x1x32xf32> to vector<1x32xf32>
    %147 = vector.broadcast %146 : vector<1x32xf32> to vector<16x32xf32>
    %148 = arith.addf %144, %147 : vector<16x32xf32>
    %c0_68 = arith.constant 0 : index
    %c0_69 = arith.constant 0 : index
    %c0_70 = arith.constant 0 : index
    %149 = vector.load %arg15[%c0_68, %c0_69, %c0_70] : memref<2x1x32xf32, #tpu.memory_space<vmem>>, vector<1x1x32xf32>
    %150 = vector.shape_cast %149 : vector<1x1x32xf32> to vector<1x32xf32>
    %c0_71 = arith.constant 0 : index
    %c0_72 = arith.constant 0 : index
    %c0_73 = arith.constant 0 : index
    %151 = vector.load %arg16[%c0_71, %c0_72, %c0_73] : memref<2x1x32xf32, #tpu.memory_space<vmem>>, vector<1x1x32xf32>
    %152 = vector.shape_cast %151 : vector<1x1x32xf32> to vector<1x32xf32>
    %cst_74 = arith.constant dense<0.000000e+00> : vector<16xf32>
    %153 = vector.multi_reduction <add>, %148, %cst_74 [1] : vector<16x32xf32> to vector<16xf32>
    %154 = vector.shape_cast %153 : vector<16xf32> to vector<16x1xf32>
    %cst_75 = arith.constant 3.200000e+01 : f32
    %155 = vector.broadcast %cst_75 : f32 to vector<16x1xf32>
    %156 = arith.divf %154, %155 : vector<16x1xf32>
    %157 = vector.broadcast %156 : vector<16x1xf32> to vector<16x32xf32>
    %158 = arith.subf %148, %157 : vector<16x32xf32>
    %159 = arith.mulf %158, %158 : vector<16x32xf32>
    %cst_76 = arith.constant dense<0.000000e+00> : vector<16xf32>
    %160 = vector.multi_reduction <add>, %159, %cst_76 [1] : vector<16x32xf32> to vector<16xf32>
    %161 = vector.shape_cast %160 : vector<16xf32> to vector<16x1xf32>
    %cst_77 = arith.constant 3.200000e+01 : f32
    %162 = vector.broadcast %cst_77 : f32 to vector<16x1xf32>
    %163 = arith.divf %161, %162 : vector<16x1xf32>
    %164 = vector.broadcast %156 : vector<16x1xf32> to vector<16x32xf32>
    %165 = arith.subf %148, %164 : vector<16x32xf32>
    %cst_78 = arith.constant 9.99999996E-13 : f32
    %166 = vector.broadcast %cst_78 : f32 to vector<16x1xf32>
    %167 = arith.addf %163, %166 : vector<16x1xf32>
    %168 = math.sqrt %167 : vector<16x1xf32>
    %169 = vector.broadcast %168 : vector<16x1xf32> to vector<16x32xf32>
    %170 = arith.divf %165, %169 : vector<16x32xf32>
    %171 = vector.broadcast %150 : vector<1x32xf32> to vector<16x32xf32>
    %172 = arith.mulf %171, %170 : vector<16x32xf32>
    %173 = vector.broadcast %152 : vector<1x32xf32> to vector<16x32xf32>
    %174 = arith.addf %172, %173 : vector<16x32xf32>
    %c0_79 = arith.constant 0 : index
    %c0_80 = arith.constant 0 : index
    %c0_81 = arith.constant 0 : index
    %175 = vector.load %arg17[%c0_79, %c0_80, %c0_81] : memref<2x32x128xf32, #tpu.memory_space<vmem>>, vector<1x32x128xf32>
    %176 = vector.shape_cast %175 : vector<1x32x128xf32> to vector<32x128xf32>
    %cst_82 = arith.constant dense<0.000000e+00> : vector<16x128xf32>
    %177 = tpu.matmul %174, %176, %cst_82 {dimension_numbers = #tpu.dot_dimension_numbers<[1], [0], [0], [1], [0, 0, 1, 1], [], []>} : vector<16x32xf32>, vector<32x128xf32>, vector<16x128xf32> -> vector<16x128xf32>
    %c0_83 = arith.constant 0 : index
    %c0_84 = arith.constant 0 : index
    %c0_85 = arith.constant 0 : index
    %178 = vector.load %arg18[%c0_83, %c0_84, %c0_85] : memref<2x1x128xf32, #tpu.memory_space<vmem>>, vector<1x1x128xf32>
    %179 = vector.shape_cast %178 : vector<1x1x128xf32> to vector<1x128xf32>
    %180 = vector.broadcast %179 : vector<1x128xf32> to vector<16x128xf32>
    %181 = arith.addf %177, %180 : vector<16x128xf32>
    %cst_86 = arith.constant 5.000000e-01 : f32
    %182 = vector.broadcast %cst_86 : f32 to vector<16x128xf32>
    %183 = arith.mulf %182, %181 : vector<16x128xf32>
    %cst_87 = arith.constant 4.471500e-02 : f32
    %184 = vector.broadcast %cst_87 : f32 to vector<16x128xf32>
    %185 = arith.mulf %184, %181 : vector<16x128xf32>
    %186 = arith.mulf %185, %181 : vector<16x128xf32>
    %187 = arith.mulf %186, %181 : vector<16x128xf32>
    %188 = arith.addf %181, %187 : vector<16x128xf32>
    %cst_88 = arith.constant 0.797884583 : f32
    %189 = vector.broadcast %cst_88 : f32 to vector<16x128xf32>
    %190 = arith.mulf %189, %188 : vector<16x128xf32>
    %191 = math.tanh %190 : vector<16x128xf32>
    %cst_89 = arith.constant 1.000000e+00 : f32
    %192 = vector.broadcast %cst_89 : f32 to vector<16x128xf32>
    %193 = arith.addf %192, %191 : vector<16x128xf32>
    %194 = arith.mulf %183, %193 : vector<16x128xf32>
    %c0_90 = arith.constant 0 : index
    %c0_91 = arith.constant 0 : index
    %c0_92 = arith.constant 0 : index
    %195 = vector.load %arg19[%c0_90, %c0_91, %c0_92] : memref<2x128x32xf32, #tpu.memory_space<vmem>>, vector<1x128x32xf32>
    %196 = vector.shape_cast %195 : vector<1x128x32xf32> to vector<128x32xf32>
    %cst_93 = arith.constant dense<0.000000e+00> : vector<16x32xf32>
    %197 = tpu.matmul %194, %196, %cst_93 {dimension_numbers = #tpu.dot_dimension_numbers<[1], [0], [0], [1], [0, 0, 1, 1], [], []>} : vector<16x128xf32>, vector<128x32xf32>, vector<16x32xf32> -> vector<16x32xf32>
    %198 = arith.addf %148, %197 : vector<16x32xf32>
    %c0_94 = arith.constant 0 : index
    %c0_95 = arith.constant 0 : index
    %c0_96 = arith.constant 0 : index
    %199 = vector.load %arg20[%c0_94, %c0_95, %c0_96] : memref<2x1x32xf32, #tpu.memory_space<vmem>>, vector<1x1x32xf32>
    %200 = vector.shape_cast %199 : vector<1x1x32xf32> to vector<1x32xf32>
    %201 = vector.broadcast %200 : vector<1x32xf32> to vector<16x32xf32>
    %202 = arith.addf %198, %201 : vector<16x32xf32>
    %c1 = arith.constant 1 : index
    %c0_97 = arith.constant 0 : index
    %c0_98 = arith.constant 0 : index
    %203 = vector.load %arg9[%c1, %c0_97, %c0_98] : memref<2x1x32xf32, #tpu.memory_space<vmem>>, vector<1x1x32xf32>
    %204 = vector.shape_cast %203 : vector<1x1x32xf32> to vector<1x32xf32>
    %c1_99 = arith.constant 1 : index
    %c0_100 = arith.constant 0 : index
    %c0_101 = arith.constant 0 : index
    %205 = vector.load %arg10[%c1_99, %c0_100, %c0_101] : memref<2x1x32xf32, #tpu.memory_space<vmem>>, vector<1x1x32xf32>
    %206 = vector.shape_cast %205 : vector<1x1x32xf32> to vector<1x32xf32>
    %cst_102 = arith.constant dense<0.000000e+00> : vector<16xf32>
    %207 = vector.multi_reduction <add>, %202, %cst_102 [1] : vector<16x32xf32> to vector<16xf32>
    %208 = vector.shape_cast %207 : vector<16xf32> to vector<16x1xf32>
    %cst_103 = arith.constant 3.200000e+01 : f32
    %209 = vector.broadcast %cst_103 : f32 to vector<16x1xf32>
    %210 = arith.divf %208, %209 : vector<16x1xf32>
    %211 = vector.broadcast %210 : vector<16x1xf32> to vector<16x32xf32>
    %212 = arith.subf %202, %211 : vector<16x32xf32>
    %213 = arith.mulf %212, %212 : vector<16x32xf32>
    %cst_104 = arith.constant dense<0.000000e+00> : vector<16xf32>
    %214 = vector.multi_reduction <add>, %213, %cst_104 [1] : vector<16x32xf32> to vector<16xf32>
    %215 = vector.shape_cast %214 : vector<16xf32> to vector<16x1xf32>
    %cst_105 = arith.constant 3.200000e+01 : f32
    %216 = vector.broadcast %cst_105 : f32 to vector<16x1xf32>
    %217 = arith.divf %215, %216 : vector<16x1xf32>
    %218 = vector.broadcast %210 : vector<16x1xf32> to vector<16x32xf32>
    %219 = arith.subf %202, %218 : vector<16x32xf32>
    %cst_106 = arith.constant 9.99999996E-13 : f32
    %220 = vector.broadcast %cst_106 : f32 to vector<16x1xf32>
    %221 = arith.addf %217, %220 : vector<16x1xf32>
    %222 = math.sqrt %221 : vector<16x1xf32>
    %223 = vector.broadcast %222 : vector<16x1xf32> to vector<16x32xf32>
    %224 = arith.divf %219, %223 : vector<16x32xf32>
    %225 = vector.broadcast %204 : vector<1x32xf32> to vector<16x32xf32>
    %226 = arith.mulf %225, %224 : vector<16x32xf32>
    %227 = vector.broadcast %206 : vector<1x32xf32> to vector<16x32xf32>
    %228 = arith.addf %226, %227 : vector<16x32xf32>
    %c1_107 = arith.constant 1 : index
    %c0_108 = arith.constant 0 : index
    %c0_109 = arith.constant 0 : index
    %229 = vector.load %arg11[%c1_107, %c0_108, %c0_109] : memref<2x32x96xf32, #tpu.memory_space<vmem>>, vector<1x32x96xf32>
    %230 = vector.shape_cast %229 : vector<1x32x96xf32> to vector<32x96xf32>
    %cst_110 = arith.constant dense<0.000000e+00> : vector<16x96xf32>
    %231 = tpu.matmul %228, %230, %cst_110 {dimension_numbers = #tpu.dot_dimension_numbers<[1], [0], [0], [1], [0, 0, 1, 1], [], []>} : vector<16x32xf32>, vector<32x96xf32>, vector<16x96xf32> -> vector<16x96xf32>
    %c1_111 = arith.constant 1 : index
    %c0_112 = arith.constant 0 : index
    %c0_113 = arith.constant 0 : index
    %232 = vector.load %arg12[%c1_111, %c0_112, %c0_113] : memref<2x1x96xf32, #tpu.memory_space<vmem>>, vector<1x1x96xf32>
    %233 = vector.shape_cast %232 : vector<1x1x96xf32> to vector<1x96xf32>
    %234 = vector.broadcast %233 : vector<1x96xf32> to vector<16x96xf32>
    %235 = arith.addf %231, %234 : vector<16x96xf32>
    %236 = vector.shape_cast %235 : vector<16x96xf32> to vector<2x8x96xf32>
    %c1_114 = arith.constant 1 : index
    %c0_115 = arith.constant 0 : index
    %c0_116 = arith.constant 0 : index
    %237 = vector.load %arg13[%c1_114, %c0_115, %c0_116] : memref<2x32x32xf32, #tpu.memory_space<vmem>>, vector<1x32x32xf32>
    %238 = vector.shape_cast %237 : vector<1x32x32xf32> to vector<32x32xf32>
    %239 = vector.extract_strided_slice %236 {offsets = [0, 0, 0], sizes = [2, 8, 8], strides = [1, 1, 1]} : vector<2x8x96xf32> to vector<2x8x8xf32>
    %240 = vector.extract_strided_slice %236 {offsets = [0, 0, 32], sizes = [2, 8, 8], strides = [1, 1, 1]} : vector<2x8x96xf32> to vector<2x8x8xf32>
    %241 = vector.extract_strided_slice %236 {offsets = [0, 0, 64], sizes = [2, 8, 8], strides = [1, 1, 1]} : vector<2x8x96xf32> to vector<2x8x8xf32>
    "tpu.trace_start"() <{level = 10 : i32, message = "bqd,bkd->bqk"}> : () -> ()
    %cst_117 = arith.constant dense<0.000000e+00> : vector<2x8x8xf32>
    %242 = tpu.matmul %239, %240, %cst_117 {dimension_numbers = #tpu.dot_dimension_numbers<[2], [2], [1], [1], [0, 0, 0, 1, 1, 1], [0], [0]>} : vector<2x8x8xf32>, vector<2x8x8xf32>, vector<2x8x8xf32> -> vector<2x8x8xf32>
    "tpu.trace_stop"() : () -> ()
    %243 = vector.broadcast %28 : vector<2x8x1xf32> to vector<2x8x8xf32>
    %244 = arith.mulf %242, %243 : vector<2x8x8xf32>
    %cst_118 = arith.constant dense<0xFF800000> : vector<2x8xf32>
    %245 = vector.multi_reduction <maximumf>, %244, %cst_118 [2] : vector<2x8x8xf32> to vector<2x8xf32>
    %246 = vector.shape_cast %245 : vector<2x8xf32> to vector<2x8x1xf32>
    %247 = vector.broadcast %246 : vector<2x8x1xf32> to vector<2x8x8xf32>
    %248 = arith.subf %244, %247 : vector<2x8x8xf32>
    %249 = math.exp %248 : vector<2x8x8xf32>
    %cst_119 = arith.constant dense<0.000000e+00> : vector<2x8xf32>
    %250 = vector.multi_reduction <add>, %249, %cst_119 [2] : vector<2x8x8xf32> to vector<2x8xf32>
    %251 = vector.shape_cast %250 : vector<2x8xf32> to vector<2x8x1xf32>
    %252 = vector.broadcast %251 : vector<2x8x1xf32> to vector<2x8x8xf32>
    %253 = arith.divf %249, %252 : vector<2x8x8xf32>
    "tpu.trace_start"() <{level = 10 : i32, message = "bqk,bkd->bqd"}> : () -> ()
    %cst_120 = arith.constant dense<0.000000e+00> : vector<2x8x8xf32>
    %254 = tpu.matmul %253, %241, %cst_120 {dimension_numbers = #tpu.dot_dimension_numbers<[2], [1], [1], [2], [0, 0, 0, 1, 1, 2], [0], [0]>} : vector<2x8x8xf32>, vector<2x8x8xf32>, vector<2x8x8xf32> -> vector<2x8x8xf32>
    "tpu.trace_stop"() : () -> ()
    %255 = vector.shape_cast %254 : vector<2x8x8xf32> to vector<16x8xf32>
    %256 = vector.extract_strided_slice %238 {offsets = [0, 0], sizes = [8, 32], strides = [1, 1]} : vector<32x32xf32> to vector<8x32xf32>
    %cst_121 = arith.constant dense<0.000000e+00> : vector<16x32xf32>
    %257 = tpu.matmul %255, %256, %cst_121 {dimension_numbers = #tpu.dot_dimension_numbers<[1], [0], [0], [1], [0, 0, 1, 1], [], []>} : vector<16x8xf32>, vector<8x32xf32>, vector<16x32xf32> -> vector<16x32xf32>
    %258 = vector.extract_strided_slice %236 {offsets = [0, 0, 8], sizes = [2, 8, 8], strides = [1, 1, 1]} : vector<2x8x96xf32> to vector<2x8x8xf32>
    %259 = vector.extract_strided_slice %236 {offsets = [0, 0, 40], sizes = [2, 8, 8], strides = [1, 1, 1]} : vector<2x8x96xf32> to vector<2x8x8xf32>
    %260 = vector.extract_strided_slice %236 {offsets = [0, 0, 72], sizes = [2, 8, 8], strides = [1, 1, 1]} : vector<2x8x96xf32> to vector<2x8x8xf32>
    "tpu.trace_start"() <{level = 10 : i32, message = "bqd,bkd->bqk"}> : () -> ()
    %cst_122 = arith.constant dense<0.000000e+00> : vector<2x8x8xf32>
    %261 = tpu.matmul %258, %259, %cst_122 {dimension_numbers = #tpu.dot_dimension_numbers<[2], [2], [1], [1], [0, 0, 0, 1, 1, 1], [0], [0]>} : vector<2x8x8xf32>, vector<2x8x8xf32>, vector<2x8x8xf32> -> vector<2x8x8xf32>
    "tpu.trace_stop"() : () -> ()
    %262 = vector.broadcast %28 : vector<2x8x1xf32> to vector<2x8x8xf32>
    %263 = arith.mulf %261, %262 : vector<2x8x8xf32>
    %cst_123 = arith.constant dense<0xFF800000> : vector<2x8xf32>
    %264 = vector.multi_reduction <maximumf>, %263, %cst_123 [2] : vector<2x8x8xf32> to vector<2x8xf32>
    %265 = vector.shape_cast %264 : vector<2x8xf32> to vector<2x8x1xf32>
    %266 = vector.broadcast %265 : vector<2x8x1xf32> to vector<2x8x8xf32>
    %267 = arith.subf %263, %266 : vector<2x8x8xf32>
    %268 = math.exp %267 : vector<2x8x8xf32>
    %cst_124 = arith.constant dense<0.000000e+00> : vector<2x8xf32>
    %269 = vector.multi_reduction <add>, %268, %cst_124 [2] : vector<2x8x8xf32> to vector<2x8xf32>
    %270 = vector.shape_cast %269 : vector<2x8xf32> to vector<2x8x1xf32>
    %271 = vector.broadcast %270 : vector<2x8x1xf32> to vector<2x8x8xf32>
    %272 = arith.divf %268, %271 : vector<2x8x8xf32>
    "tpu.trace_start"() <{level = 10 : i32, message = "bqk,bkd->bqd"}> : () -> ()
    %cst_125 = arith.constant dense<0.000000e+00> : vector<2x8x8xf32>
    %273 = tpu.matmul %272, %260, %cst_125 {dimension_numbers = #tpu.dot_dimension_numbers<[2], [1], [1], [2], [0, 0, 0, 1, 1, 2], [0], [0]>} : vector<2x8x8xf32>, vector<2x8x8xf32>, vector<2x8x8xf32> -> vector<2x8x8xf32>
    "tpu.trace_stop"() : () -> ()
    %274 = vector.shape_cast %273 : vector<2x8x8xf32> to vector<16x8xf32>
    %275 = vector.extract_strided_slice %238 {offsets = [8, 0], sizes = [8, 32], strides = [1, 1]} : vector<32x32xf32> to vector<8x32xf32>
    %cst_126 = arith.constant dense<0.000000e+00> : vector<16x32xf32>
    %276 = tpu.matmul %274, %275, %cst_126 {dimension_numbers = #tpu.dot_dimension_numbers<[1], [0], [0], [1], [0, 0, 1, 1], [], []>} : vector<16x8xf32>, vector<8x32xf32>, vector<16x32xf32> -> vector<16x32xf32>
    %277 = arith.addf %257, %276 : vector<16x32xf32>
    %278 = vector.extract_strided_slice %236 {offsets = [0, 0, 16], sizes = [2, 8, 8], strides = [1, 1, 1]} : vector<2x8x96xf32> to vector<2x8x8xf32>
    %279 = vector.extract_strided_slice %236 {offsets = [0, 0, 48], sizes = [2, 8, 8], strides = [1, 1, 1]} : vector<2x8x96xf32> to vector<2x8x8xf32>
    %280 = vector.extract_strided_slice %236 {offsets = [0, 0, 80], sizes = [2, 8, 8], strides = [1, 1, 1]} : vector<2x8x96xf32> to vector<2x8x8xf32>
    "tpu.trace_start"() <{level = 10 : i32, message = "bqd,bkd->bqk"}> : () -> ()
    %cst_127 = arith.constant dense<0.000000e+00> : vector<2x8x8xf32>
    %281 = tpu.matmul %278, %279, %cst_127 {dimension_numbers = #tpu.dot_dimension_numbers<[2], [2], [1], [1], [0, 0, 0, 1, 1, 1], [0], [0]>} : vector<2x8x8xf32>, vector<2x8x8xf32>, vector<2x8x8xf32> -> vector<2x8x8xf32>
    "tpu.trace_stop"() : () -> ()
    %282 = vector.broadcast %28 : vector<2x8x1xf32> to vector<2x8x8xf32>
    %283 = arith.mulf %281, %282 : vector<2x8x8xf32>
    %cst_128 = arith.constant dense<0xFF800000> : vector<2x8xf32>
    %284 = vector.multi_reduction <maximumf>, %283, %cst_128 [2] : vector<2x8x8xf32> to vector<2x8xf32>
    %285 = vector.shape_cast %284 : vector<2x8xf32> to vector<2x8x1xf32>
    %286 = vector.broadcast %285 : vector<2x8x1xf32> to vector<2x8x8xf32>
    %287 = arith.subf %283, %286 : vector<2x8x8xf32>
    %288 = math.exp %287 : vector<2x8x8xf32>
    %cst_129 = arith.constant dense<0.000000e+00> : vector<2x8xf32>
    %289 = vector.multi_reduction <add>, %288, %cst_129 [2] : vector<2x8x8xf32> to vector<2x8xf32>
    %290 = vector.shape_cast %289 : vector<2x8xf32> to vector<2x8x1xf32>
    %291 = vector.broadcast %290 : vector<2x8x1xf32> to vector<2x8x8xf32>
    %292 = arith.divf %288, %291 : vector<2x8x8xf32>
    "tpu.trace_start"() <{level = 10 : i32, message = "bqk,bkd->bqd"}> : () -> ()
    %cst_130 = arith.constant dense<0.000000e+00> : vector<2x8x8xf32>
    %293 = tpu.matmul %292, %280, %cst_130 {dimension_numbers = #tpu.dot_dimension_numbers<[2], [1], [1], [2], [0, 0, 0, 1, 1, 2], [0], [0]>} : vector<2x8x8xf32>, vector<2x8x8xf32>, vector<2x8x8xf32> -> vector<2x8x8xf32>
    "tpu.trace_stop"() : () -> ()
    %294 = vector.shape_cast %293 : vector<2x8x8xf32> to vector<16x8xf32>
    %295 = vector.extract_strided_slice %238 {offsets = [16, 0], sizes = [8, 32], strides = [1, 1]} : vector<32x32xf32> to vector<8x32xf32>
    %cst_131 = arith.constant dense<0.000000e+00> : vector<16x32xf32>
    %296 = tpu.matmul %294, %295, %cst_131 {dimension_numbers = #tpu.dot_dimension_numbers<[1], [0], [0], [1], [0, 0, 1, 1], [], []>} : vector<16x8xf32>, vector<8x32xf32>, vector<16x32xf32> -> vector<16x32xf32>
    %297 = arith.addf %277, %296 : vector<16x32xf32>
    %298 = vector.extract_strided_slice %236 {offsets = [0, 0, 24], sizes = [2, 8, 8], strides = [1, 1, 1]} : vector<2x8x96xf32> to vector<2x8x8xf32>
    %299 = vector.extract_strided_slice %236 {offsets = [0, 0, 56], sizes = [2, 8, 8], strides = [1, 1, 1]} : vector<2x8x96xf32> to vector<2x8x8xf32>
    %300 = vector.extract_strided_slice %236 {offsets = [0, 0, 88], sizes = [2, 8, 8], strides = [1, 1, 1]} : vector<2x8x96xf32> to vector<2x8x8xf32>
    "tpu.trace_start"() <{level = 10 : i32, message = "bqd,bkd->bqk"}> : () -> ()
    %cst_132 = arith.constant dense<0.000000e+00> : vector<2x8x8xf32>
    %301 = tpu.matmul %298, %299, %cst_132 {dimension_numbers = #tpu.dot_dimension_numbers<[2], [2], [1], [1], [0, 0, 0, 1, 1, 1], [0], [0]>} : vector<2x8x8xf32>, vector<2x8x8xf32>, vector<2x8x8xf32> -> vector<2x8x8xf32>
    "tpu.trace_stop"() : () -> ()
    %302 = vector.broadcast %28 : vector<2x8x1xf32> to vector<2x8x8xf32>
    %303 = arith.mulf %301, %302 : vector<2x8x8xf32>
    %cst_133 = arith.constant dense<0xFF800000> : vector<2x8xf32>
    %304 = vector.multi_reduction <maximumf>, %303, %cst_133 [2] : vector<2x8x8xf32> to vector<2x8xf32>
    %305 = vector.shape_cast %304 : vector<2x8xf32> to vector<2x8x1xf32>
    %306 = vector.broadcast %305 : vector<2x8x1xf32> to vector<2x8x8xf32>
    %307 = arith.subf %303, %306 : vector<2x8x8xf32>
    %308 = math.exp %307 : vector<2x8x8xf32>
    %cst_134 = arith.constant dense<0.000000e+00> : vector<2x8xf32>
    %309 = vector.multi_reduction <add>, %308, %cst_134 [2] : vector<2x8x8xf32> to vector<2x8xf32>
    %310 = vector.shape_cast %309 : vector<2x8xf32> to vector<2x8x1xf32>
    %311 = vector.broadcast %310 : vector<2x8x1xf32> to vector<2x8x8xf32>
    %312 = arith.divf %308, %311 : vector<2x8x8xf32>
    "tpu.trace_start"() <{level = 10 : i32, message = "bqk,bkd->bqd"}> : () -> ()
    %cst_135 = arith.constant dense<0.000000e+00> : vector<2x8x8xf32>
    %313 = tpu.matmul %312, %300, %cst_135 {dimension_numbers = #tpu.dot_dimension_numbers<[2], [1], [1], [2], [0, 0, 0, 1, 1, 2], [0], [0]>} : vector<2x8x8xf32>, vector<2x8x8xf32>, vector<2x8x8xf32> -> vector<2x8x8xf32>
    "tpu.trace_stop"() : () -> ()
    %314 = vector.shape_cast %313 : vector<2x8x8xf32> to vector<16x8xf32>
    %315 = vector.extract_strided_slice %238 {offsets = [24, 0], sizes = [8, 32], strides = [1, 1]} : vector<32x32xf32> to vector<8x32xf32>
    %cst_136 = arith.constant dense<0.000000e+00> : vector<16x32xf32>
    %316 = tpu.matmul %314, %315, %cst_136 {dimension_numbers = #tpu.dot_dimension_numbers<[1], [0], [0], [1], [0, 0, 1, 1], [], []>} : vector<16x8xf32>, vector<8x32xf32>, vector<16x32xf32> -> vector<16x32xf32>
    %317 = arith.addf %297, %316 : vector<16x32xf32>
    %318 = arith.addf %202, %317 : vector<16x32xf32>
    %c1_137 = arith.constant 1 : index
    %c0_138 = arith.constant 0 : index
    %c0_139 = arith.constant 0 : index
    %319 = vector.load %arg14[%c1_137, %c0_138, %c0_139] : memref<2x1x32xf32, #tpu.memory_space<vmem>>, vector<1x1x32xf32>
    %320 = vector.shape_cast %319 : vector<1x1x32xf32> to vector<1x32xf32>
    %321 = vector.broadcast %320 : vector<1x32xf32> to vector<16x32xf32>
    %322 = arith.addf %318, %321 : vector<16x32xf32>
    %c1_140 = arith.constant 1 : index
    %c0_141 = arith.constant 0 : index
    %c0_142 = arith.constant 0 : index
    %323 = vector.load %arg15[%c1_140, %c0_141, %c0_142] : memref<2x1x32xf32, #tpu.memory_space<vmem>>, vector<1x1x32xf32>
    %324 = vector.shape_cast %323 : vector<1x1x32xf32> to vector<1x32xf32>
    %c1_143 = arith.constant 1 : index
    %c0_144 = arith.constant 0 : index
    %c0_145 = arith.constant 0 : index
    %325 = vector.load %arg16[%c1_143, %c0_144, %c0_145] : memref<2x1x32xf32, #tpu.memory_space<vmem>>, vector<1x1x32xf32>
    %326 = vector.shape_cast %325 : vector<1x1x32xf32> to vector<1x32xf32>
    %cst_146 = arith.constant dense<0.000000e+00> : vector<16xf32>
    %327 = vector.multi_reduction <add>, %322, %cst_146 [1] : vector<16x32xf32> to vector<16xf32>
    %328 = vector.shape_cast %327 : vector<16xf32> to vector<16x1xf32>
    %cst_147 = arith.constant 3.200000e+01 : f32
    %329 = vector.broadcast %cst_147 : f32 to vector<16x1xf32>
    %330 = arith.divf %328, %329 : vector<16x1xf32>
    %331 = vector.broadcast %330 : vector<16x1xf32> to vector<16x32xf32>
    %332 = arith.subf %322, %331 : vector<16x32xf32>
    %333 = arith.mulf %332, %332 : vector<16x32xf32>
    %cst_148 = arith.constant dense<0.000000e+00> : vector<16xf32>
    %334 = vector.multi_reduction <add>, %333, %cst_148 [1] : vector<16x32xf32> to vector<16xf32>
    %335 = vector.shape_cast %334 : vector<16xf32> to vector<16x1xf32>
    %cst_149 = arith.constant 3.200000e+01 : f32
    %336 = vector.broadcast %cst_149 : f32 to vector<16x1xf32>
    %337 = arith.divf %335, %336 : vector<16x1xf32>
    %338 = vector.broadcast %330 : vector<16x1xf32> to vector<16x32xf32>
    %339 = arith.subf %322, %338 : vector<16x32xf32>
    %cst_150 = arith.constant 9.99999996E-13 : f32
    %340 = vector.broadcast %cst_150 : f32 to vector<16x1xf32>
    %341 = arith.addf %337, %340 : vector<16x1xf32>
    %342 = math.sqrt %341 : vector<16x1xf32>
    %343 = vector.broadcast %342 : vector<16x1xf32> to vector<16x32xf32>
    %344 = arith.divf %339, %343 : vector<16x32xf32>
    %345 = vector.broadcast %324 : vector<1x32xf32> to vector<16x32xf32>
    %346 = arith.mulf %345, %344 : vector<16x32xf32>
    %347 = vector.broadcast %326 : vector<1x32xf32> to vector<16x32xf32>
    %348 = arith.addf %346, %347 : vector<16x32xf32>
    %c1_151 = arith.constant 1 : index
    %c0_152 = arith.constant 0 : index
    %c0_153 = arith.constant 0 : index
    %349 = vector.load %arg17[%c1_151, %c0_152, %c0_153] : memref<2x32x128xf32, #tpu.memory_space<vmem>>, vector<1x32x128xf32>
    %350 = vector.shape_cast %349 : vector<1x32x128xf32> to vector<32x128xf32>
    %cst_154 = arith.constant dense<0.000000e+00> : vector<16x128xf32>
    %351 = tpu.matmul %348, %350, %cst_154 {dimension_numbers = #tpu.dot_dimension_numbers<[1], [0], [0], [1], [0, 0, 1, 1], [], []>} : vector<16x32xf32>, vector<32x128xf32>, vector<16x128xf32> -> vector<16x128xf32>
    %c1_155 = arith.constant 1 : index
    %c0_156 = arith.constant 0 : index
    %c0_157 = arith.constant 0 : index
    %352 = vector.load %arg18[%c1_155, %c0_156, %c0_157] : memref<2x1x128xf32, #tpu.memory_space<vmem>>, vector<1x1x128xf32>
    %353 = vector.shape_cast %352 : vector<1x1x128xf32> to vector<1x128xf32>
    %354 = vector.broadcast %353 : vector<1x128xf32> to vector<16x128xf32>
    %355 = arith.addf %351, %354 : vector<16x128xf32>
    %cst_158 = arith.constant 5.000000e-01 : f32
    %356 = vector.broadcast %cst_158 : f32 to vector<16x128xf32>
    %357 = arith.mulf %356, %355 : vector<16x128xf32>
    %cst_159 = arith.constant 4.471500e-02 : f32
    %358 = vector.broadcast %cst_159 : f32 to vector<16x128xf32>
    %359 = arith.mulf %358, %355 : vector<16x128xf32>
    %360 = arith.mulf %359, %355 : vector<16x128xf32>
    %361 = arith.mulf %360, %355 : vector<16x128xf32>
    %362 = arith.addf %355, %361 : vector<16x128xf32>
    %cst_160 = arith.constant 0.797884583 : f32
    %363 = vector.broadcast %cst_160 : f32 to vector<16x128xf32>
    %364 = arith.mulf %363, %362 : vector<16x128xf32>
    %365 = math.tanh %364 : vector<16x128xf32>
    %cst_161 = arith.constant 1.000000e+00 : f32
    %366 = vector.broadcast %cst_161 : f32 to vector<16x128xf32>
    %367 = arith.addf %366, %365 : vector<16x128xf32>
    %368 = arith.mulf %357, %367 : vector<16x128xf32>
    %c1_162 = arith.constant 1 : index
    %c0_163 = arith.constant 0 : index
    %c0_164 = arith.constant 0 : index
    %369 = vector.load %arg19[%c1_162, %c0_163, %c0_164] : memref<2x128x32xf32, #tpu.memory_space<vmem>>, vector<1x128x32xf32>
    %370 = vector.shape_cast %369 : vector<1x128x32xf32> to vector<128x32xf32>
    %cst_165 = arith.constant dense<0.000000e+00> : vector<16x32xf32>
    %371 = tpu.matmul %368, %370, %cst_165 {dimension_numbers = #tpu.dot_dimension_numbers<[1], [0], [0], [1], [0, 0, 1, 1], [], []>} : vector<16x128xf32>, vector<128x32xf32>, vector<16x32xf32> -> vector<16x32xf32>
    %372 = arith.addf %322, %371 : vector<16x32xf32>
    %c1_166 = arith.constant 1 : index
    %c0_167 = arith.constant 0 : index
    %c0_168 = arith.constant 0 : index
    %373 = vector.load %arg20[%c1_166, %c0_167, %c0_168] : memref<2x1x32xf32, #tpu.memory_space<vmem>>, vector<1x1x32xf32>
    %374 = vector.shape_cast %373 : vector<1x1x32xf32> to vector<1x32xf32>
    %375 = vector.broadcast %374 : vector<1x32xf32> to vector<16x32xf32>
    %376 = arith.addf %372, %375 : vector<16x32xf32>
    %c0_169 = arith.constant 0 : index
    %c0_170 = arith.constant 0 : index
    %377 = vector.load %arg21[%c0_169, %c0_170] : memref<1x32xf32, #tpu.memory_space<vmem>>, vector<1x32xf32>
    %c0_171 = arith.constant 0 : index
    %c0_172 = arith.constant 0 : index
    %378 = vector.load %arg22[%c0_171, %c0_172] : memref<1x32xf32, #tpu.memory_space<vmem>>, vector<1x32xf32>
    %cst_173 = arith.constant dense<0.000000e+00> : vector<16xf32>
    %379 = vector.multi_reduction <add>, %376, %cst_173 [1] : vector<16x32xf32> to vector<16xf32>
    %380 = vector.shape_cast %379 : vector<16xf32> to vector<16x1xf32>
    %cst_174 = arith.constant 3.200000e+01 : f32
    %381 = vector.broadcast %cst_174 : f32 to vector<16x1xf32>
    %382 = arith.divf %380, %381 : vector<16x1xf32>
    %383 = vector.broadcast %382 : vector<16x1xf32> to vector<16x32xf32>
    %384 = arith.subf %376, %383 : vector<16x32xf32>
    %385 = arith.mulf %384, %384 : vector<16x32xf32>
    %cst_175 = arith.constant dense<0.000000e+00> : vector<16xf32>
    %386 = vector.multi_reduction <add>, %385, %cst_175 [1] : vector<16x32xf32> to vector<16xf32>
    %387 = vector.shape_cast %386 : vector<16xf32> to vector<16x1xf32>
    %cst_176 = arith.constant 3.200000e+01 : f32
    %388 = vector.broadcast %cst_176 : f32 to vector<16x1xf32>
    %389 = arith.divf %387, %388 : vector<16x1xf32>
    %390 = vector.broadcast %382 : vector<16x1xf32> to vector<16x32xf32>
    %391 = arith.subf %376, %390 : vector<16x32xf32>
    %cst_177 = arith.constant 9.99999996E-13 : f32
    %392 = vector.broadcast %cst_177 : f32 to vector<16x1xf32>
    %393 = arith.addf %389, %392 : vector<16x1xf32>
    %394 = math.sqrt %393 : vector<16x1xf32>
    %395 = vector.broadcast %394 : vector<16x1xf32> to vector<16x32xf32>
    %396 = arith.divf %391, %395 : vector<16x32xf32>
    %397 = vector.broadcast %377 : vector<1x32xf32> to vector<16x32xf32>
    %398 = arith.mulf %397, %396 : vector<16x32xf32>
    %399 = vector.broadcast %378 : vector<1x32xf32> to vector<16x32xf32>
    %400 = arith.addf %398, %399 : vector<16x32xf32>
    %401 = vector.shape_cast %400 : vector<16x32xf32> to vector<2x8x32xf32>
    %c0_178 = arith.constant 0 : index
    %c0_179 = arith.constant 0 : index
    %c0_180 = arith.constant 0 : index
    %402 = vector.load %arg23[%c0_178, %c0_179, %c0_180] : memref<2x8x32xf32, #tpu.memory_space<vmem>>, vector<2x8x32xf32>
    tpu.vector_store %arg23[%c0_178, %c0_179, %c0_180], %401 {strides = array<i32>} : memref<2x8x32xf32, #tpu.memory_space<vmem>>, vector<2x8x32xf32>,
    return
  }
}

</mosaic_0001>

<bundles_post_ra>
// kernel: tpu_custom_call.1
= control target key start
LH: loop header
LB: loop body
LE: loop exit
PB: predicated region body
PF: predicated region fallthrough
CT: control target
= control target key end

     0   :  { %s6285_s0 = inlined_call_operand.vmem [shape: f32[2,32], index: 0, kind: input, shape index: {}]   ;;  %s6286_s1 = inlined_call_operand.vmem [shape: f32[2,32], index: 1, kind: input, shape index: {}]   ;;  %s6287_s2 = inlined_call_operand.vmem [shape: f32[2,8,1], index: 2, kind: input, shape index: {}]   ;;  %s6288_s3 = inlined_call_operand.vmem [shape: f32[2,8,32], index: 3, kind: input, shape index: {}]   ;;  %s6289_s4 = inlined_call_operand.vmem [shape: f32[2,8,32], index: 4, kind: input, shape index: {}]   ;;  %s6290_s5 = inlined_call_operand.vmem [shape: f32[32,128], index: 5, kind: input, shape index: {}]   ;;  %s6291_s6 = inlined_call_operand.vmem [shape: f32[1,128], index: 6, kind: input, shape index: {}]   ;;  %s6292_s7 = inlined_call_operand.vmem [shape: f32[128,32], index: 7, kind: input, shape index: {}]   ;;  %s6293_s8 = inlined_call_operand.vmem [shape: f32[1,32], index: 8, kind: input, shape index: {}]   ;;  %s6294_s9 = inlined_call_operand.vmem [shape: f32[2,1,32], index: 9, kind: input, shape index: {}]   ;;  %s6295_s10 = inlined_call_operand.vmem [shape: f32[2,1,32], index: 10, kind: input, shape index: {}]   ;;  %s6296_s11 = inlined_call_operand.vmem [shape: f32[2,32,96], index: 11, kind: input, shape index: {}]   ;;  %s6297_s12 = inlined_call_operand.vmem [shape: f32[2,1,96], index: 12, kind: input, shape index: {}]   ;;  %s6298_s13 = inlined_call_operand.vmem [shape: f32[2,32,32], index: 13, kind: input, shape index: {}]   ;;  %s6299_s14 = inlined_call_operand.vmem [shape: f32[2,1,32], index: 14, kind: input, shape index: {}]   ;;  %s6300_s15 = inlined_call_operand.vmem [shape: f32[2,1,32], index: 15, kind: input, shape index: {}]   ;;  %s6301_s16 = inlined_call_operand.vmem [shape: f32[2,1,32], index: 16, kind: input, shape index: {}]   ;;  %s6302_s17 = inlined_call_operand.vmem [shape: f32[2,32,128], index: 17, kind: input, shape index: {}]   ;;  %s6303_s18 = inlined_call_operand.vmem [shape: f32[2,1,128], index: 18, kind: input, shape index: {}]   ;;  %s6304_s19 = inlined_call_operand.vmem [shape: f32[2,128,32], index: 19, kind: input, shape index: {}]   ;;  %s6305_s20 = inlined_call_operand.vmem [shape: f32[2,1,32], index: 20, kind: input, shape index: {}]   ;;  %s6306_s21 = inlined_call_operand.vmem [shape: f32[1,32], index: 21, kind: input, shape index: {}]   ;;  %s6307_s22 = inlined_call_operand.vmem [shape: f32[1,32], index: 22, kind: input, shape index: {}]   ;;  %s6308_s23 = inlined_call_operand.hbm [shape: f32[2,8,32], index: 23, kind: output, shape index: {}]  }
   0x1   :  { %6320 = sst [smem:[#allocation5_spill]] %s6285_s0 }
   0x2   :  { %6321 = sst [smem:[#allocation6_spill]] %s6286_s1 }
   0x3   :  { %6322 = sst [smem:[#allocation7_spill]] %s6287_s2 }
   0x4   :  { %6323 = sst [smem:[#allocation8_spill]] %s6288_s3 }
   0x5   :  { %6324 = sst [smem:[#allocation9_spill]] %s6289_s4 }
   0x6   :  { %6325 = sst [smem:[#allocation10_spill]] %s6290_s5 }
   0x7   :  { %6326 = sst [smem:[#allocation11_spill]] %s6291_s6 }
   0x8   :  { %6327 = sst [smem:[#allocation12_spill]] %s6292_s7 }
   0x9   :  { %s6328_s24 = sld [smem:[#allocation10_spill]]  ;;  %v5401_v1 = vmov 0.0   ;;  %vm5402_vm0 = vmmov 0  }
   0xa   :  { %4883 = vmatprep.subr.mxu0 %v5401_v1  ;;  %4891 = vmatprep.mubr.msk.f32.mxu0 %vm5402_vm0, %v5401_v1 }
   0xb   :  { %4894 = vmatprep.subr.mxu1 %v5401_v1 }
   0xf   :  { %v79_v0 = vld [vmem:[%s6328_s24 + $0x18] sm:$0xff]  ;;  %v78_v2 = vld [vmem:[%s6328_s24 + $0x10] sm:$0xff] }
  0x10   :  { %4884 = vmatpush3.msra.mxu0 %v79_v0 }
  0x11   :  { %28 = vsyncpa [#allocation3], 0  ;;  %4885 = vmatprep.subr.mxu0 %v5401_v1  ;;  %v77_v3 = vld [vmem:[%s6328_s24 + $0x8] sm:$0xff]  ;;  %4926 = vmatprep.mubr.msk.f32.mxu1 %vm5402_vm0, %v5401_v1  ;;  %v76_v4 = vld [vmem:[%s6328_s24] sm:$0xff]  ;;  %s6329_s28 = sld [smem:[#allocation5_spill]]  ;;  %vm87_vm1 = vcmask 261120   ;;  %v271_v34 = vlaneseq }
  0x12   :  { %4886 = vmatpush3.msra.mxu0 %v78_v2  ;;  %s6330_s0 = sld [smem:[#allocation12_spill]]  ;;  %v5403_v32 = vmov 1966171168   ;;  %v4586_v37 = vld [vmem:[%s6293_s8] ss:$0 sm:$0xff]  ;;  %s5405_s24 = smov 96  }
  0x13   :  { %4887 = vmatprep.subr.mxu0 %v5401_v1  ;;  %s6331_s5 = sld [smem:[#allocation11_spill]]  ;;  %v269_v33 = vunpack.c.l.s4 %v5403_v32  ;;  %v272_v36 = vshrl.u32 %v271_v34, 7  ;;  %vm464_vm6 = vcmask 64512   ;;  %s5406_s2 = smov 64  }
  0x14   :  { %4888 = vmatpush3.msra.mxu0 %v77_v3  ;;  %s6332_s6 = sld [smem:[#allocation6_spill]]  ;;  %s5408_s27 = smov 120  }
  0x15   :  { %4889 = vmatprep.subr.mxu0 %v5401_v1  ;;  %v270_v35 = vunpack.c.0.s8 %v269_v33  ;;  %v292_v45 = vsub.s32 0, %v272_v36  ;;  %s6334_s3 = sld [smem:[#allocation8_spill]]  ;;  %s5409_s7 = smov 56  }
  0x16   :  { %4890 = vmatpush3.msra.mxu0 %v76_v4  ;;  %s5411_s8 = smov 112   ;;  %s5412_s29 = smov 48  }
  0x17   :  { %v75_v5 = vld [vmem:[%s6329_s28] sm:$0x3]  ;;  %v273_v41 = vsub.s32 %v270_v35, %v272_v36  ;;  %s6333_s28 = sld [smem:[#allocation9_spill]]  ;;  %s6314_s4 = smov 40  }
  0x18   :  { %4892 = vmatmul.mubr.msk.f32.vlgmr.msra.gmra.mxu0 %vm87_vm1, %v75_v5  ;;  %v183_v6 = vld [vmem:[%s6330_s0 + $0x78] sm:$0xff]  ;;  %v182_v7 = vld [vmem:[%s6330_s0 + $0x70] sm:$0xff]  ;;  %v181_v8 = vld [vmem:[%s6330_s0 + $0x68] sm:$0xff] }
  0x19   :  { %4895 = vmatpush3.msra.mxu1 %v183_v6  ;;  %v180_v9 = vld [vmem:[%s6330_s0 + $0x60] sm:$0xff]  ;;  %v179_v10 = vld [vmem:[%s6330_s0 + $0x58] sm:$0xff]  ;;  %v178_v11 = vld [vmem:[%s6330_s0 + $0x50] sm:$0xff] }
  0x1a   :  { %4896 = vmatprep.subr.mxu1 %v5401_v1  ;;  %v177_v12 = vld [vmem:[%s6330_s0 + $0x48] sm:$0xff]  ;;  %v176_v13 = vld [vmem:[%s6330_s0 + $0x40] sm:$0xff]  ;;  %v175_v14 = vld [vmem:[%s6330_s0 + $0x38] sm:$0xff] }
  0x1b   :  { %4897 = vmatpush3.msra.mxu1 %v182_v7  ;;  %v174_v15 = vld [vmem:[%s6330_s0 + $0x30] sm:$0xff]  ;;  %v173_v16 = vld [vmem:[%s6330_s0 + $0x28] sm:$0xff]  ;;  %v172_v17 = vld [vmem:[%s6330_s0 + $0x20] sm:$0xff] }
  0x1c   :  { %4898 = vmatprep.subr.mxu1 %v5401_v1  ;;  %v171_v18 = vld [vmem:[%s6330_s0 + $0x18] sm:$0xff]  ;;  %v170_v19 = vld [vmem:[%s6330_s0 + $0x10] sm:$0xff]  ;;  %v169_v20 = vld [vmem:[%s6330_s0 + $0x8] sm:$0xff] }
  0x1d   :  { %4899 = vmatpush3.msra.mxu1 %v181_v8  ;;  %v168_v21 = vld [vmem:[%s6330_s0] sm:$0xff]  ;;  %v266_v52 = vld [vmem:[%s6333_s28 + $0x8] sm:$0xff]  ;;  %v368_v8 = vld [vmem:[%s6296_s11 + $0x18] sm:$0xff]  ;;  %s6335_s0 = sld [smem:[#allocation7_spill]] }
  0x1e   :  { %4900 = vmatprep.subr.mxu1 %v5401_v1  ;;  %v4584_v22 = vld [vmem:[%s6331_s5] ss:$0 sm:$0xff]  ;;  %v264_v55 = vld [vmem:[%s6334_s3 + $0x8] sm:$0xff]  ;;  %4929 = vmatprep.subr.mxu0 %v368_v8  ;;  %s5416_s5 = smov [#allocation2]  }
  0x1f   :  { %4901 = vmatpush3.msra.mxu1 %v180_v9  ;;  %v261_v39 = vld [vmem:[%s6332_s6] sm:$0x3]  ;;  %v367_v9 = vld [vmem:[%s6296_s11 + $0x10] sm:$0xff]  ;;  %4930 = vmatpush3.msra.mxu0 %v368_v8  ;;  %s5407_s6 = smov 88  }
  0x20   :  { %4902 = vmatprep.subr.mxu1 %v5401_v1  ;;  %v265_v48 = vld [vmem:[%s6333_s28] sm:$0xff]  ;;  %4931 = vmatprep.subr.mxu0 %v367_v9  ;;  %s5410_s28 = smov 80  }
  0x21   :  { %4903 = vmatpush3.msra.mxu1 %v179_v10  ;;  %v263_v51 = vld [vmem:[%s6334_s3] sm:$0xff]  ;;  %v366_v10 = vld [vmem:[%s6296_s11 + $0x8] sm:$0xff]  ;;  %4932 = vmatpush3.msra.mxu0 %v367_v9  ;;  %s6318_s3 = smov 72  }
  0x22   :  { %4904 = vmatprep.subr.mxu1 %v5401_v1  ;;  %4933 = vmatprep.subr.mxu0 %v366_v10 }
  0x23   :  { %4905 = vmatpush3.msra.mxu1 %v178_v11  ;;  %4934 = vmatpush3.msra.mxu0 %v366_v10  ;;  %v365_v11 = vld [vmem:[%s6296_s11] sm:$0xff] }
  0x24   :  { %4906 = vmatprep.subr.mxu1 %v5401_v1  ;;  %4935 = vmatprep.subr.mxu0 %v365_v11 }
  0x25   :  { %4907 = vmatpush3.msra.mxu1 %v177_v12  ;;  %4936 = vmatpush3.msra.mxu0 %v365_v11 }
  0x26   :  { %4908 = vmatprep.subr.mxu1 %v5401_v1  ;;  %4940 = vmatprep.subr.mxu0 %v5401_v1 }
  0x27   :  { %4909 = vmatpush3.msra.mxu1 %v176_v13 }
  0x28   :  { %4910 = vmatprep.subr.mxu1 %v5401_v1 }
  0x29   :  { %4911 = vmatpush3.msra.mxu1 %v175_v14 }
  0x2a   :  { %4912 = vmatprep.subr.mxu1 %v5401_v1 }
  0x2b   :  { %4913 = vmatpush3.msra.mxu1 %v174_v15 }
  0x2c   :  { %4914 = vmatprep.subr.mxu1 %v5401_v1 }
  0x2d   :  { %4915 = vmatpush3.msra.mxu1 %v173_v16 }
  0x2e   :  { %4916 = vmatprep.subr.mxu1 %v5401_v1 }
  0x2f   :  { %4917 = vmatpush3.msra.mxu1 %v172_v17 }
  0x30   :  { %4918 = vmatprep.subr.mxu1 %v5401_v1 }
  0x31   :  { %4919 = vmatpush3.msra.mxu1 %v171_v18 }
  0x32   :  { %4920 = vmatprep.subr.mxu1 %v5401_v1 }
  0x33   :  { %4921 = vmatpush3.msra.mxu1 %v170_v19 }
  0x34   :  { %4922 = vmatprep.subr.mxu1 %v5401_v1 }
  0x35   :  { %4923 = vmatpush3.msra.mxu1 %v169_v20 }
  0x36   :  { %4924 = vmatprep.subr.mxu1 %v5401_v1 }
  0x37   :  { %4925 = vmatpush3.msra.mxu1 %v168_v21 }
  0x38   :  { %4995 = vmatprep.subr.mxu1 %v5401_v1 }
  0xd8   :  { %v157_v23 = vpop.f32.mrf.mxu0 }
  0xd9   :  { %v158_v24 = vadd.f32 %v4584_v22, %v157_v23 }
  0xda   :  { %v4893_v25 = vpop.f32.mrf.mxu0 }
  0xdb   :  { %v161_v26 = vsub.f32 0.0, %v158_v24 }
  0xdd   :  { %v162_v27 = vmul.f32 1.442695, %v161_v26 }
  0xdf   :  { %5263 = vpow2.f32 %v162_v27 }
  0xec   :  { %v5264_v28 = vpop.eup %5263 }
  0xed   :  { %v164_v29 = vadd.f32 1.0, %v5264_v28 }
  0xef   :  { %5265 = vrcp.f32 %v164_v29  ;;  %v4587_v29 = vld [vmem:[%s6294_s9] ss:$0 sm:$0xff] }
  0xfc   :  { %v5266_v30 = vpop.eup %5265 }
  0xfd   :  { %v167_v31 = vmul.f32 %v5266_v30, %v158_v24 }
  0xff   :  { %4927 = vmatmul.mubr.f32.vlgmr.msra.gmra.mxu1 %v167_v31  ;;  %v4588_v31 = vld [vmem:[%s6295_s10] ss:$0 sm:$0xff] }
 0x100   :  { %4997 = vmatprep.mubr.msk.f32.mxu1 %vm5402_vm0, %v5401_v1 }
 0x1bf   :  { %v257_v38 = vpop.f32.mrf.mxu1 }
 0x1c0   :  { %v258_v40 = vadd.f32 %v4586_v37, %v257_v38  ;;  %v4589_v38 = vld [vmem:[%s6297_s12] ss:$0 sm:$0xff] }
 0x1c1   :  { %v4928_v42 = vpop.f32.mrf.mxu1 }
 0x1c2   :  { %v262_v43 = vadd.f32 %v261_v39, %v258_v40  ;;  %v5404_v40 = vmov 0  }
 0x1c3   :  { %5261 = vset.pattern.permute.xlu1 %v5404_v40  ;;  %5262 = vset.pattern.permute.xlu0 %v5404_v40 }
 0x1c4   :  { %v274_v44 = vrot.slane %v262_v43, %v273_v41 }
 0x1c6   :  { %v275_v46 = vcombine.high %v274_v44, %v274_v44  ;;  %v282_v47 = vrot.slane %v274_v44, %v273_v41  ;;  %v304_v44 = vld [vmem:[%s6335_s0] sm:$0xff] }
 0x1c8   :  { %v289_v49 = vrot.slane %v275_v46, %v273_v41  ;;  %v293_v50 = vrot.slane %v282_v47, %v292_v45 }
 0x1ca   :  { %v300_v53 = vmul.f32 %v293_v50, %v265_v48  ;;  %v297_v54 = vrot.slane %v289_v49, %v292_v45  ;;  %v305_v45 = vld [vmem:[%s6335_s0 + $0x8] sm:$0xff]  ;;  %s6316_s0 = smov 104  }
 0x1cc   :  { %v5651_v56 = vadd.f32 %v300_v53, %v263_v51  ;;  %v301_v57 = vmul.f32 %v297_v54, %v266_v52 }
 0x1ce   :  { %v308_v58 = vsel %vm87_vm1, %v5651_v56, 0.0  ;;  %v5655_v59 = vadd.f32 %v301_v57, %v264_v55 }
 0x1cf   :  { %309 = vadd.xlane.f32.xlu0 %v308_v58 }
 0x1d0   :  { %v311_v60 = vsel %vm87_vm1, %v5655_v59, 0.0 }
 0x1d3   :  { %312 = vadd.xlane.f32.xlu0 %v311_v60 }
 0x258   :  { %v310_v61 = vpop.xlane.xlu0 %309 }
 0x259   :  { %v315_v62 = vmul.f32 0.03125, %v310_v61 }
 0x25b   :  { %v317_v63 = vsub.f32 %v5651_v56, %v315_v62 }
 0x25c   :  { %v313_v0 = vpop.xlane.xlu0 %312 }
 0x25d   :  { %v316_v2 = vmul.f32 0.03125, %v313_v0  ;;  %v319_v3 = vmul.f32 %v317_v63, %v317_v63 }
 0x25f   :  { %v318_v4 = vsub.f32 %v5655_v59, %v316_v2  ;;  %v321_v5 = vsel %vm87_vm1, %v319_v3, 0.0 }
 0x260   :  { %322 = vadd.xlane.f32.xlu1 %v321_v5 }
 0x261   :  { %v320_v6 = vmul.f32 %v318_v4, %v318_v4 }
 0x263   :  { %v324_v7 = vsel %vm87_vm1, %v320_v6, 0.0 }
 0x264   :  { %325 = vadd.xlane.f32.xlu1 %v324_v7 }
 0x2e9   :  { %v323_v12 = vpop.xlane.xlu1 %322 }
 0x2ea   :  { %v327_v13 = vmul.f32 0.03125, %v323_v12 }
 0x2ec   :  { %v329_v14 = vadd.f32 1e-12, %v327_v13 }
 0x2ed   :  { %v326_v15 = vpop.xlane.xlu1 %325 }
 0x2ee   :  { %5267 = vrsqrt.f32 %v329_v14  ;;  %v328_v16 = vmul.f32 0.03125, %v326_v15  ;;  %vm333_vm2 = vcmp.eq.f32.partialorder %v329_v14, inf  ;;  %v336_v20 = vand.u32 2147483648, %v329_v14 }
 0x2ef   :  { %vm335_vm3 = vcmp.eq.f32.partialorder %v329_v14, 0.0 }
 0x2f0   :  { %v330_v17 = vadd.f32 1e-12, %v328_v16 }
 0x2f2   :  { %5269 = vrsqrt.f32 %v330_v17  ;;  %vm340_vm4 = vcmp.eq.f32.partialorder %v330_v17, inf  ;;  %v343_v25 = vand.u32 2147483648, %v330_v17  ;;  %vm342_vm5 = vcmp.eq.f32.partialorder %v330_v17, 0.0 }
 0x2fb   :  { %v5268_v18 = vpop.eup %5267 }
 0x2fc   :  { %v332_v19 = vmul.f32 %v5268_v18, %v329_v14 }
 0x2fe   :  { %v334_v21 = vsel %vm333_vm2, %v329_v14, %v332_v19 }
 0x2ff   :  { %v337_v22 = vsel %vm335_vm3, %v336_v20, %v334_v21  ;;  %v5270_v23 = vpop.eup %5269 }
 0x300   :  { %5271 = vrcp.f32 %v337_v22  ;;  %v339_v24 = vmul.f32 %v5270_v23, %v330_v17 }
 0x302   :  { %v341_v26 = vsel %vm340_vm4, %v330_v17, %v339_v24 }
 0x303   :  { %v344_v27 = vsel %vm342_vm5, %v343_v25, %v341_v26 }
 0x304   :  { %5273 = vrcp.f32 %v344_v27 }
 0x30d   :  { %v5272_v28 = vpop.eup %5271 }
 0x30e   :  { %v346_v30 = vmul.f32 %v5272_v28, %v317_v63 }
 0x310   :  { %v355_v32 = vmul.f32 %v4587_v29, %v346_v30 }
 0x311   :  { %v5274_v33 = vpop.eup %5273 }
 0x312   :  { %v363_v34 = vadd.f32 %v4588_v31, %v355_v32  ;;  %v348_v35 = vmul.f32 %v5274_v33, %v318_v4 }
 0x314   :  { %4937 = vmatprep.mubr.msk.f32.mxu0 %vm87_vm1, %v363_v34  ;;  %v356_v36 = vmul.f32 %v4587_v29, %v348_v35 }
 0x316   :  { %v364_v37 = vadd.f32 %v4588_v31, %v356_v36 }
 0x318   :  { %4938 = vmatmul.mubr.msk.f32.vlgmr.msra.gmra.mxu0 %vm87_vm1, %v364_v37 }
 0x319   :  { %4942 = vmatprep.mubr.msk.f32.mxu0 %vm5402_vm0, %v5401_v1 }
 0x3d8   :  { %v4939_v39 = vpop.f32.mrf.mxu0 }
 0x3d9   :  { %v5689_v41 = vadd.f32 %v4939_v39, %v4589_v38 }
 0x3da   :  { %v448_v42 = vpop.f32.mrf.mxu0 }
 0x3db   :  { %v5691_v43 = vadd.f32 %v4589_v38, %v448_v42  ;;  %540 = vrot.lane.b32.xlu1 %v5689_v41, %s5405_s24 }
 0x3dd   :  { %462 = vrot.lane.b32.xlu0 %v5691_v43, %s5405_s24 }
 0x3df   :  { %618 = vperm.xlu1 %5261, %v304_v44  }
 0x3e3   :  { %623 = vperm.xlu1 %5261, %v305_v45  }
 0x44d   :  { %v541_v47 = vpop.permute.xlu1 %540 }
 0x44f   :  { %v463_v46 = vpop.permute.xlu0 %462 }
 0x450   :  { %4941 = vmatpush3.xpose.msk.msra.mxu0 %vm464_vm6, %v463_v46 }
 0x451   :  { %4945 = vmatprep.subr.mxu0 %v5401_v1 }
 0x453   :  { %4943 = vmatmul.mubr.msk.f32.vlgmr.msra.gmra.mxu0 %vm464_vm6, %v5691_v43 }
 0x454   :  { %4946 = vmatpush3.xpose.msk.msra.mxu0 %vm464_vm6, %v541_v47  ;;  %4947 = vmatprep.mubr.msk.f32.mxu0 %vm5402_vm0, %v5401_v1 }
 0x455   :  { %4950 = vmatprep.subr.mxu0 %v5401_v1 }
 0x457   :  { %4948 = vmatmul.mubr.msk.f32.vlgmr.msra.gmra.mxu0 %vm464_vm6, %v5689_v41 }
 0x458   :  { %4952 = vmatprep.mubr.msk.f32.mxu0 %vm5402_vm0, %v5401_v1 }
 0x45a   :  { %v5715_v48 = vpop.permute.xlu1 %618 }
 0x45e   :  { %v5719_v53 = vpop.permute.xlu1 %623 }
 0x513   :  { %v535_v49 = vpop.f32.mrf.mxu0 }
 0x514   :  { %v626_v50 = vmul.f32 %v5715_v48, %v535_v49 }
 0x515   :  { %v4944_v51 = vpop.f32.mrf.mxu0 }
 0x516   :  { %v628_v52 = vsel %vm464_vm6, %v626_v50, -inf }
 0x517   :  { %629 = vmax.xlane.f32.xlu0 %v628_v52  ;;  %v612_v54 = vpop.f32.mrf.mxu0 }
 0x518   :  { %v627_v55 = vmul.f32 %v5719_v53, %v612_v54 }
 0x519   :  { %v4949_v57 = vpop.f32.mrf.mxu0 }
 0x51a   :  { %v631_v58 = vsel %vm464_vm6, %v627_v55, -inf }
 0x51b   :  { %632 = vmax.xlane.f32.xlu1 %v631_v58 }
 0x52c   :  { %726 = vrot.lane.b32.xlu1 %v5689_v41, %s5406_s2 }
 0x530   :  { %804 = vrot.lane.b32.xlu1 %v5691_v43, %s5407_s6 }
 0x534   :  { %802 = vrot.lane.b32.xlu1 %v5691_v43, %s5408_s27 }
 0x538   :  { %880 = vrot.lane.b32.xlu1 %v5689_v41, %s5408_s27 }
 0x5a0   :  { %v630_v60 = vpop.xlane.xlu0 %629 }
 0x5a1   :  { %v634_v61 = vsub.f32 %v626_v50, %v630_v60 }
 0x5a3   :  { %v636_v62 = vmul.f32 1.442695, %v634_v61 }
 0x5a4   :  { %v633_v63 = vpop.xlane.xlu1 %632 }
 0x5a5   :  { %5275 = vpow2.f32 %v636_v62  ;;  %v635_v0 = vsub.f32 %v627_v55, %v633_v63  ;;  %v458_v62 = vld [vmem:[%s6298_s13 + $0x8] sm:$0xff]  ;;  %v457_v63 = vld [vmem:[%s6298_s13] sm:$0xff] }
 0x5a7   :  { %v638_v2 = vmul.f32 1.442695, %v635_v0 }
 0x5a8   :  { %v727_v10 = vpop.permute.xlu1 %726 }
 0x5a9   :  { %5277 = vpow2.f32 %v638_v2 }
 0x5ac   :  { %v805_v13 = vpop.permute.xlu1 %804 }
 0x5b0   :  { %v803_v16 = vpop.permute.xlu1 %802 }
 0x5b2   :  { %v5276_v3 = vpop.eup %5275 }
 0x5b3   :  { %v640_v4 = vsel %vm464_vm6, %v5276_v3, 0.0 }
 0x5b4   :  { %641 = vadd.xlane.f32.xlu0 %v640_v4  ;;  %v881_v18 = vpop.permute.xlu1 %880 }
 0x5b6   :  { %v5278_v5 = vpop.eup %5277 }
 0x5b7   :  { %v643_v6 = vsel %vm464_vm6, %v5278_v5, 0.0 }
 0x5b8   :  { %644 = vadd.xlane.f32.xlu0 %v643_v6 }
 0x5ce   :  { %650 = vrot.lane.b32.xlu0 %v5691_v43, %s5406_s2 }
 0x5d2   :  { %882 = vrot.lane.b32.xlu0 %v5689_v41, %s5407_s6 }
 0x63d   :  { %v642_v7 = vpop.xlane.xlu0 %641 }
 0x63e   :  { %5279 = vrcp.f32 %v642_v7 }
 0x641   :  { %v645_v8 = vpop.xlane.xlu0 %644 }
 0x642   :  { %5281 = vrcp.f32 %v645_v8 }
 0x645   :  { %v651_v9 = vpop.permute.xlu0 %650 }
 0x646   :  { %4951 = vmatpush3.msra.mxu0 %v651_v9 }
 0x647   :  { %4955 = vmatprep.subr.mxu0 %v5401_v1 }
 0x649   :  { %v883_v17 = vpop.permute.xlu0 %882 }
 0x64b   :  { %v5280_v11 = vpop.eup %5279 }
 0x64c   :  { %v647_v12 = vmul.f32 %v5280_v11, %v5276_v3 }
 0x64e   :  { %4953 = vmatmul.mubr.msk.f32.vlgmr.msra.gmra.mxu0 %vm464_vm6, %v647_v12 }
 0x64f   :  { %v5282_v14 = vpop.eup %5281  ;;  %4956 = vmatpush3.msra.mxu0 %v727_v10  ;;  %4957 = vmatprep.mubr.msk.f32.mxu0 %vm5402_vm0, %v5401_v1 }
 0x650   :  { %4960 = vmatprep.subr.mxu0 %v5401_v1  ;;  %v649_v15 = vmul.f32 %v5282_v14, %v5278_v5 }
 0x652   :  { %4958 = vmatmul.mubr.msk.f32.vlgmr.msra.gmra.mxu0 %vm464_vm6, %v649_v15 }
 0x653   :  { %4961 = vmatpush3.xpose.msk.msra.mxu0 %vm464_vm6, %v805_v13  ;;  %4962 = vmatprep.mubr.msk.f32.mxu0 %vm5402_vm0, %v5401_v1 }
 0x654   :  { %4965 = vmatprep.subr.mxu0 %v5401_v1 }
 0x656   :  { %4963 = vmatmul.mubr.msk.f32.vlgmr.msra.gmra.mxu0 %vm464_vm6, %v803_v16 }
 0x657   :  { %4966 = vmatpush3.xpose.msk.msra.mxu0 %vm464_vm6, %v883_v17  ;;  %4967 = vmatprep.mubr.msk.f32.mxu0 %vm5402_vm0, %v5401_v1 }
 0x658   :  { %4970 = vmatprep.subr.mxu0 %v5401_v1 }
 0x65a   :  { %4968 = vmatmul.mubr.msk.f32.vlgmr.msra.gmra.mxu0 %vm464_vm6, %v881_v18 }
 0x65b   :  { %4972 = vmatprep.mubr.msk.f32.mxu0 %vm5402_vm0, %v5401_v1 }
 0x70e   :  { %v5755_v19 = vpop.f32.mrf.mxu0 }
 0x710   :  { %v4954_v20 = vpop.f32.mrf.mxu0 }
 0x712   :  { %v5757_v21 = vpop.f32.mrf.mxu0 }
 0x714   :  { %v4959_v22 = vpop.f32.mrf.mxu0 }
 0x716   :  { %v876_v23 = vpop.f32.mrf.mxu0 }
 0x717   :  { %v958_v24 = vmul.f32 %v876_v23, %v5715_v48 }
 0x718   :  { %v4964_v25 = vpop.f32.mrf.mxu0 }
 0x719   :  { %v960_v26 = vsel %vm464_vm6, %v958_v24, -inf }
 0x71a   :  { %961 = vmax.xlane.f32.xlu0 %v960_v26  ;;  %v954_v27 = vpop.f32.mrf.mxu0 }
 0x71b   :  { %v959_v28 = vmul.f32 %v954_v27, %v5719_v53 }
 0x71c   :  { %v4969_v29 = vpop.f32.mrf.mxu0 }
 0x71d   :  { %v963_v30 = vsel %vm464_vm6, %v959_v28, -inf }
 0x71e   :  { %964 = vmax.xlane.f32.xlu1 %v963_v30 }
 0x72f   :  { %1058 = vrot.lane.b32.xlu1 %v5689_v41, %s5409_s7 }
 0x733   :  { %1298 = vrot.lane.b32.xlu1 %v5691_v43, %s5410_s28 }
 0x737   :  { %1376 = vrot.lane.b32.xlu1 %v5689_v41, %s5410_s28 }
 0x73b   :  { %1374 = vrot.lane.b32.xlu1 %v5689_v41, %s5411_s8 }
 0x7a3   :  { %v962_v31 = vpop.xlane.xlu0 %961 }
 0x7a4   :  { %v966_v32 = vsub.f32 %v958_v24, %v962_v31 }
 0x7a6   :  { %v968_v33 = vmul.f32 1.442695, %v966_v32 }
 0x7a7   :  { %v965_v34 = vpop.xlane.xlu1 %964 }
 0x7a8   :  { %5283 = vpow2.f32 %v968_v33  ;;  %v967_v35 = vsub.f32 %v959_v28, %v965_v34 }
 0x7aa   :  { %v970_v36 = vmul.f32 1.442695, %v967_v35 }
 0x7ab   :  { %v1059_v37 = vpop.permute.xlu1 %1058 }
 0x7ac   :  { %5285 = vpow2.f32 %v970_v36 }
 0x7af   :  { %v1299_v38 = vpop.permute.xlu1 %1298 }
 0x7b3   :  { %v1377_v39 = vpop.permute.xlu1 %1376 }
 0x7b4   :  { %4996 = vmatpush3.xpose.msk.msra.mxu1 %vm464_vm6, %v1377_v39 }
 0x7b5   :  { %v5284_v40 = vpop.eup %5283  ;;  %5005 = vmatprep.subr.mxu1 %v5401_v1 }
 0x7b6   :  { %v972_v42 = vsel %vm464_vm6, %v5284_v40, 0.0 }
 0x7b7   :  { %973 = vadd.xlane.f32.xlu0 %v972_v42  ;;  %v1375_v44 = vpop.permute.xlu1 %1374 }
 0x7b8   :  { %4998 = vmatmul.mubr.msk.f32.vlgmr.msra.gmra.mxu1 %vm464_vm6, %v1375_v44 }
 0x7b9   :  { %v5286_v45 = vpop.eup %5285  ;;  %5007 = vmatprep.mubr.msk.f32.mxu1 %vm5402_vm0, %v5401_v1 }
 0x7ba   :  { %v975_v46 = vsel %vm464_vm6, %v5286_v45, 0.0 }
 0x7bb   :  { %976 = vadd.xlane.f32.xlu0 %v975_v46 }
 0x7d1   :  { %982 = vrot.lane.b32.xlu0 %v5691_v43, %s5409_s7 }
 0x7d5   :  { %1296 = vrot.lane.b32.xlu0 %v5691_v43, %s5411_s8 }
 0x840   :  { %v974_v47 = vpop.xlane.xlu0 %973 }
 0x841   :  { %5287 = vrcp.f32 %v974_v47 }
 0x844   :  { %v977_v49 = vpop.xlane.xlu0 %976 }
 0x845   :  { %5289 = vrcp.f32 %v977_v49 }
 0x848   :  { %v983_v50 = vpop.permute.xlu0 %982 }
 0x849   :  { %4971 = vmatpush3.msra.mxu0 %v983_v50 }
 0x84a   :  { %4975 = vmatprep.subr.mxu0 %v5401_v1 }
 0x84c   :  { %v1297_v7 = vpop.permute.xlu0 %1296 }
 0x84e   :  { %v5288_v51 = vpop.eup %5287 }
 0x84f   :  { %v979_v52 = vmul.f32 %v5288_v51, %v5284_v40 }
 0x851   :  { %4973 = vmatmul.mubr.msk.f32.vlgmr.msra.gmra.mxu0 %vm464_vm6, %v979_v52 }
 0x852   :  { %v5290_v54 = vpop.eup %5289  ;;  %4976 = vmatpush3.msra.mxu0 %v1059_v37  ;;  %4977 = vmatprep.mubr.msk.f32.mxu0 %vm5402_vm0, %v5401_v1 }
 0x853   :  { %v981_v55 = vmul.f32 %v5290_v54, %v5286_v45  ;;  %4980 = vmatprep.subr.mxu0 %v458_v62 }
 0x855   :  { %4978 = vmatmul.mubr.msk.f32.vlgmr.msra.gmra.mxu0 %vm464_vm6, %v981_v55 }
 0x856   :  { %4981 = vmatpush3.msra.mxu0 %v458_v62 }
 0x857   :  { %4985 = vmatprep.subr.mxu0 %v457_v63 }
 0x878   :  { %v1448_v57 = vpop.f32.mrf.mxu1 }
 0x879   :  { %v1453_v58 = vmul.f32 %v1448_v57, %v5719_v53 }
 0x87a   :  { %v4999_v60 = vpop.f32.mrf.mxu1 }
 0x87b   :  { %v1457_v61 = vsel %vm464_vm6, %v1453_v58, -inf }
 0x87c   :  { %1458 = vmax.xlane.f32.xlu1 %v1457_v61 }
 0x88d   :  { %1552 = vrot.lane.b32.xlu1 %v5689_v41, %s5412_s29 }
 0x891   :  { %1713 = vrot.lane.b32.xlu1 %v5691_v43, %s6318_s3 }
 0x895   :  { %1791 = vrot.lane.b32.xlu1 %v5689_v41, %s6318_s3 }
 0x899   :  { %1789 = vrot.lane.b32.xlu1 %v5689_v41, %s6316_s0 }
 0x905   :  { %v1459_v0 = vpop.xlane.xlu1 %1458 }
 0x906   :  { %v1461_v8 = vsub.f32 %v1453_v58, %v1459_v0 }
 0x908   :  { %v1464_v9 = vmul.f32 1.442695, %v1461_v8 }
 0x909   :  { %v1553_v2 = vpop.permute.xlu1 %1552 }
 0x90a   :  { %5006 = vmatpush3.msra.mxu1 %v1553_v2  ;;  %5291 = vpow2.f32 %v1464_v9 }
 0x90b   :  { %5015 = vmatprep.subr.mxu1 %v5401_v1 }
 0x90d   :  { %v1714_v30 = vpop.permute.xlu1 %1713 }
 0x911   :  { %v1054_v3 = vpop.f32.mrf.mxu0  ;;  %v1792_v45 = vpop.permute.xlu1 %1791 }
 0x912   :  { %4982 = vmatprep.mubr.msk.f32.mxu0 %vm464_vm6, %v1054_v3 }
 0x913   :  { %v4974_v4 = vpop.f32.mrf.mxu0 }
 0x915   :  { %v1130_v5 = vpop.f32.mrf.mxu0  ;;  %v1790_v49 = vpop.permute.xlu1 %1789 }
 0x916   :  { %4983 = vmatmul.mubr.msk.f32.vlgmr.msra.gmra.mxu0 %vm464_vm6, %v1130_v5 }
 0x917   :  { %v4979_v6 = vpop.f32.mrf.mxu0  ;;  %4986 = vmatpush3.msra.mxu0 %v457_v63  ;;  %4987 = vmatprep.mubr.msk.f32.mxu0 %vm464_vm6, %v5755_v19  ;;  %v5292_v20 = vpop.eup %5291 }
 0x918   :  { %4990 = vmatprep.subr.mxu0 %v5401_v1 }
 0x91a   :  { %4988 = vmatmul.mubr.msk.f32.vlgmr.msra.gmra.mxu0 %vm464_vm6, %v5757_v21  ;;  %v1469_v21 = vsel %vm464_vm6, %v5292_v20, 0.0 }
 0x91b   :  { %4991 = vmatpush3.xpose.msk.msra.mxu0 %vm464_vm6, %v1299_v38  ;;  %4992 = vmatprep.mubr.msk.f32.mxu0 %vm5402_vm0, %v5401_v1  ;;  %v459_v38 = vld [vmem:[%s6298_s13 + $0x10] sm:$0xff] }
 0x91c   :  { %5000 = vmatprep.subr.mxu0 %v5401_v1 }
 0x91e   :  { %4993 = vmatmul.mubr.msk.f32.vlgmr.msra.gmra.mxu0 %vm464_vm6, %v1297_v7 }
 0x91f   :  { %5002 = vmatprep.mubr.msk.f32.mxu0 %vm5402_vm0, %v5401_v1 }
 0x9d6   :  { %v4984_v10 = vpop.f32.mrf.mxu0 }
 0x9d8   :  { %v1206_v11 = vpop.f32.mrf.mxu0 }
 0x9da   :  { %v4989_v12 = vpop.f32.mrf.mxu0 }
 0x9db   :  { %v5818_v13 = vadd.f32 %v4989_v12, %v4984_v10 }
 0x9dc   :  { %v1287_v14 = vpop.f32.mrf.mxu0 }
 0x9dd   :  { %v5820_v15 = vadd.f32 %v1287_v14, %v1206_v11 }
 0x9de   :  { %v1370_v16 = vpop.f32.mrf.mxu0 }
 0x9df   :  { %v1452_v17 = vmul.f32 %v1370_v16, %v5715_v48 }
 0x9e0   :  { %v4994_v18 = vpop.f32.mrf.mxu0 }
 0x9e1   :  { %v1454_v19 = vsel %vm464_vm6, %v1452_v17, -inf }
 0x9e2   :  { %1455 = vmax.xlane.f32.xlu0 %v1454_v19 }
 0x9e6   :  { %1470 = vadd.xlane.f32.xlu0 %v1469_v21  ;;  %v4624_v21 = vld [vmem:[%s6299_s14] ss:$0 sm:$0xff] }
 0xa6b   :  { %v1456_v22 = vpop.xlane.xlu0 %1455 }
 0xa6c   :  { %v1460_v23 = vsub.f32 %v1452_v17, %v1456_v22 }
 0xa6e   :  { %v1462_v24 = vmul.f32 1.442695, %v1460_v23 }
 0xa6f   :  { %v1471_v25 = vpop.xlane.xlu0 %1470 }
 0xa70   :  { %5293 = vpow2.f32 %v1462_v24 }
 0xa71   :  { %5295 = vrcp.f32 %v1471_v25 }
 0xa7d   :  { %v5294_v26 = vpop.eup %5293 }
 0xa7e   :  { %v5296_v27 = vpop.eup %5295  ;;  %v1466_v28 = vsel %vm464_vm6, %v5294_v26, 0.0 }
 0xa7f   :  { %1467 = vadd.xlane.f32.xlu0 %v1466_v28  ;;  %v1475_v29 = vmul.f32 %v5296_v27, %v5292_v20 }
 0xa81   :  { %5008 = vmatmul.mubr.msk.f32.vlgmr.msra.gmra.mxu1 %vm464_vm6, %v1475_v29 }
 0xa82   :  { %5016 = vmatpush3.xpose.msk.msra.mxu1 %vm464_vm6, %v1714_v30  ;;  %5017 = vmatprep.mubr.msk.f32.mxu1 %vm5402_vm0, %v5401_v1 }
 0xa83   :  { %5025 = vmatprep.subr.mxu1 %v5401_v1 }
 0xa95   :  { %1476 = vrot.lane.b32.xlu0 %v5691_v43, %s5412_s29 }
 0xa99   :  { %1711 = vrot.lane.b32.xlu0 %v5691_v43, %s6316_s0 }
 0xb08   :  { %v1468_v31 = vpop.xlane.xlu0 %1467 }
 0xb09   :  { %5297 = vrcp.f32 %v1468_v31 }
 0xb0c   :  { %v1477_v32 = vpop.permute.xlu0 %1476 }
 0xb0d   :  { %5001 = vmatpush3.msra.mxu0 %v1477_v32 }
 0xb0e   :  { %5010 = vmatprep.subr.mxu0 %v459_v38 }
 0xb10   :  { %v1712_v33 = vpop.permute.xlu0 %1711 }
 0xb11   :  { %5018 = vmatmul.mubr.msk.f32.vlgmr.msra.gmra.mxu1 %vm464_vm6, %v1712_v33 }
 0xb12   :  { %5027 = vmatprep.mubr.msk.f32.mxu1 %vm5402_vm0, %v5401_v1 }
 0xb16   :  { %v5298_v34 = vpop.eup %5297 }
 0xb17   :  { %v1473_v35 = vmul.f32 %v5298_v34, %v5294_v26 }
 0xb19   :  { %5003 = vmatmul.mubr.msk.f32.vlgmr.msra.gmra.mxu0 %vm464_vm6, %v1473_v35 }
 0xb1a   :  { %5011 = vmatpush3.msra.mxu0 %v459_v38  ;;  %v2198_v38 = vld [vmem:[%s6302_s17 + $0x18] sm:$0xff] }
 0xb1b   :  { %5020 = vmatprep.subr.mxu0 %v5401_v1 }
 0xb41   :  { %v1624_v36 = vpop.f32.mrf.mxu1 }
 0xb43   :  { %v5009_v37 = vpop.f32.mrf.mxu1 }
 0xbd1   :  { %v1785_v39 = vpop.f32.mrf.mxu1 }
 0xbd2   :  { %v1867_v40 = vmul.f32 %v1785_v39, %v5715_v48  ;;  %v2197_v39 = vld [vmem:[%s6302_s17 + $0x10] sm:$0xff] }
 0xbd3   :  { %v5019_v42 = vpop.f32.mrf.mxu1 }
 0xbd4   :  { %v1869_v44 = vsel %vm464_vm6, %v1867_v40, -inf  ;;  %v2195_v42 = vld [vmem:[%s6302_s17] sm:$0xff] }
 0xbd5   :  { %1870 = vmax.xlane.f32.xlu0 %v1869_v44 }
 0xbd9   :  { %v1548_v46 = vpop.f32.mrf.mxu0 }
 0xbda   :  { %5012 = vmatprep.mubr.msk.f32.mxu0 %vm464_vm6, %v1548_v46 }
 0xbdb   :  { %v5004_v47 = vpop.f32.mrf.mxu0  ;;  %5013 = vmatmul.mubr.msk.f32.vlgmr.msra.gmra.mxu0 %vm464_vm6, %v1624_v36 }
 0xbdc   :  { %5021 = vmatpush3.xpose.msk.msra.mxu0 %vm464_vm6, %v1792_v45  ;;  %5022 = vmatprep.mubr.msk.f32.mxu0 %vm5402_vm0, %v5401_v1 }
 0xbdd   :  { %5030 = vmatprep.subr.mxu0 %v5401_v1 }
 0xbdf   :  { %5023 = vmatmul.mubr.msk.f32.vlgmr.msra.gmra.mxu0 %vm464_vm6, %v1790_v49 }
 0xbe0   :  { %5032 = vmatprep.mubr.msk.f32.mxu0 %vm5402_vm0, %v5401_v1 }
 0xc5e   :  { %v1871_v50 = vpop.xlane.xlu0 %1870 }
 0xc5f   :  { %v1875_v51 = vsub.f32 %v1867_v40, %v1871_v50  ;;  %v2196_v40 = vld [vmem:[%s6302_s17 + $0x8] sm:$0xff] }
 0xc61   :  { %v1877_v52 = vmul.f32 1.442695, %v1875_v51 }
 0xc63   :  { %5299 = vpow2.f32 %v1877_v52 }
 0xc70   :  { %v5300_v54 = vpop.eup %5299 }
 0xc71   :  { %v1881_v55 = vsel %vm464_vm6, %v5300_v54, 0.0 }
 0xc72   :  { %1882 = vadd.xlane.f32.xlu0 %v1881_v55 }
 0xc9b   :  { %v5014_v57 = vpop.f32.mrf.mxu0 }
 0xc9c   :  { %v1710_v58 = vadd.f32 %v5014_v57, %v5818_v13 }
 0xc9d   :  { %v1700_v60 = vpop.f32.mrf.mxu0 }
 0xc9e   :  { %v1709_v61 = vadd.f32 %v1700_v60, %v5820_v15  ;;  %v460_v15 = vld [vmem:[%s6298_s13 + $0x18] sm:$0xff] }
 0xc9f   :  { %v1863_v62 = vpop.f32.mrf.mxu0 }
 0xca0   :  { %v1868_v63 = vmul.f32 %v1863_v62, %v5719_v53 }
 0xca1   :  { %v5024_v0 = vpop.f32.mrf.mxu0 }
 0xca2   :  { %v1872_v2 = vsel %vm464_vm6, %v1868_v63, -inf }
 0xca3   :  { %1873 = vmax.xlane.f32.xlu1 %v1872_v2 }
 0xcb4   :  { %1967 = vrot.lane.b32.xlu1 %v5689_v41, %s6314_s4 }
 0xcfb   :  { %v1883_v9 = vpop.xlane.xlu0 %1882 }
 0xd2c   :  { %v1874_v3 = vpop.xlane.xlu1 %1873 }
 0xd2d   :  { %v1876_v4 = vsub.f32 %v1868_v63, %v1874_v3  ;;  %v4625_v3 = vld [vmem:[%s6300_s15] ss:$0 sm:$0xff] }
 0xd2f   :  { %v1879_v5 = vmul.f32 1.442695, %v1876_v4 }
 0xd30   :  { %v1968_v6 = vpop.permute.xlu1 %1967 }
 0xd31   :  { %5301 = vpow2.f32 %v1879_v5  ;;  %5031 = vmatpush3.msra.mxu0 %v1968_v6 }
 0xd32   :  { %5303 = vrcp.f32 %v1883_v9  ;;  %5040 = vmatprep.subr.mxu0 %v2198_v38 }
 0xd3e   :  { %v5302_v7 = vpop.eup %5301 }
 0xd3f   :  { %v1884_v8 = vsel %vm464_vm6, %v5302_v7, 0.0  ;;  %v5304_v11 = vpop.eup %5303 }
 0xd40   :  { %1885 = vadd.xlane.f32.xlu0 %v1884_v8  ;;  %v1888_v41 = vmul.f32 %v5304_v11, %v5300_v54  ;;  %v2320_v11 = vld [vmem:[%s6304_s19 + $0x78] sm:$0xff] }
 0xd56   :  { %1891 = vrot.lane.b32.xlu0 %v5691_v43, %s6314_s4 }
 0xdc9   :  { %v1886_v10 = vpop.xlane.xlu0 %1885 }
 0xdca   :  { %5305 = vrcp.f32 %v1886_v10 }
 0xdcd   :  { %v1892_v12 = vpop.permute.xlu0 %1891 }
 0xdce   :  { %5026 = vmatpush3.msra.mxu1 %v1892_v12  ;;  %v2319_v12 = vld [vmem:[%s6304_s19 + $0x70] sm:$0xff] }
 0xdcf   :  { %5028 = vmatmul.mubr.msk.f32.vlgmr.msra.gmra.mxu1 %vm464_vm6, %v1888_v41  ;;  %5035 = vmatprep.subr.mxu1 %v460_v15  ;;  %v2318_v41 = vld [vmem:[%s6304_s19 + $0x68] sm:$0xff] }
 0xdd0   :  { %5036 = vmatpush3.msra.mxu1 %v460_v15  ;;  %v2315_v15 = vld [vmem:[%s6304_s19 + $0x50] sm:$0xff] }
 0xdd1   :  { %5051 = vmatprep.subr.mxu1 %v2320_v11 }
 0xdd7   :  { %v5306_v13 = vpop.eup %5305 }
 0xdd8   :  { %v1890_v14 = vmul.f32 %v5306_v13, %v5302_v7  ;;  %v4626_v7 = vld [vmem:[%s6301_s16] ss:$0 sm:$0xff] }
 0xdd9   :  { %v2317_v13 = vld [vmem:[%s6304_s19 + $0x60] sm:$0xff] }
 0xdda   :  { %5033 = vmatmul.mubr.msk.f32.vlgmr.msra.gmra.mxu0 %vm464_vm6, %v1890_v14  ;;  %v2316_v14 = vld [vmem:[%s6304_s19 + $0x58] sm:$0xff] }
 0xddb   :  { %5041 = vmatpush3.msra.mxu0 %v2198_v38 }
 0xddc   :  { %5042 = vmatprep.subr.mxu0 %v2197_v39 }
 0xddd   :  { %5043 = vmatpush3.msra.mxu0 %v2197_v39 }
 0xdde   :  { %5044 = vmatprep.subr.mxu0 %v2196_v40 }
 0xddf   :  { %5045 = vmatpush3.msra.mxu0 %v2196_v40 }
 0xde0   :  { %5046 = vmatprep.subr.mxu0 %v2195_v42 }
 0xde1   :  { %5047 = vmatpush3.msra.mxu0 %v2195_v42 }
 0xe8f   :  { %v1963_v43 = vpop.f32.mrf.mxu1 }
 0xe90   :  { %5037 = vmatprep.mubr.msk.f32.mxu1 %vm464_vm6, %v1963_v43  ;;  %v2314_v43 = vld [vmem:[%s6304_s19 + $0x48] sm:$0xff] }
 0xe91   :  { %v5029_v16 = vpop.f32.mrf.mxu1 }
 0xe92   :  { %v2313_v16 = vld [vmem:[%s6304_s19 + $0x40] sm:$0xff] }
 0xe9a   :  { %v2039_v17 = vpop.f32.mrf.mxu0 }
 0xe9b   :  { %5038 = vmatmul.mubr.msk.f32.vlgmr.msra.gmra.mxu1 %vm464_vm6, %v2039_v17  ;;  %v2312_v17 = vld [vmem:[%s6304_s19 + $0x38] sm:$0xff] }
 0xe9c   :  { %v5034_v18 = vpop.f32.mrf.mxu0  ;;  %5052 = vmatpush3.msra.mxu1 %v2320_v11  ;;  %v4635_v11 = vld [vmem:[%s6296_s11 + $0x20] sm:$0xff] }
 0xe9d   :  { %5053 = vmatprep.subr.mxu1 %v2319_v12  ;;  %v2311_v18 = vld [vmem:[%s6304_s19 + $0x30] sm:$0xff] }
 0xe9e   :  { %5054 = vmatpush3.msra.mxu1 %v2319_v12 }
 0xe9f   :  { %5055 = vmatprep.subr.mxu1 %v2318_v41 }
 0xea0   :  { %5056 = vmatpush3.msra.mxu1 %v2318_v41 }
 0xea1   :  { %5057 = vmatprep.subr.mxu1 %v2317_v13 }
 0xea2   :  { %5058 = vmatpush3.msra.mxu1 %v2317_v13 }
 0xea3   :  { %5059 = vmatprep.subr.mxu1 %v2316_v14 }
 0xea4   :  { %5060 = vmatpush3.msra.mxu1 %v2316_v14 }
 0xea5   :  { %5061 = vmatprep.subr.mxu1 %v2315_v15 }
 0xea6   :  { %5062 = vmatpush3.msra.mxu1 %v2315_v15 }
 0xea7   :  { %5063 = vmatprep.subr.mxu1 %v2314_v43 }
 0xea8   :  { %5064 = vmatpush3.msra.mxu1 %v2314_v43 }
 0xea9   :  { %5065 = vmatprep.subr.mxu1 %v2313_v16 }
 0xeaa   :  { %5066 = vmatpush3.msra.mxu1 %v2313_v16 }
 0xeab   :  { %5067 = vmatprep.subr.mxu1 %v2312_v17 }
 0xeac   :  { %5068 = vmatpush3.msra.mxu1 %v2312_v17 }
 0xead   :  { %5069 = vmatprep.subr.mxu1 %v2311_v18 }
 0xeae   :  { %5070 = vmatpush3.msra.mxu1 %v2311_v18 }
 0xf5b   :  { %v5039_v19 = vpop.f32.mrf.mxu1 }
 0xf5c   :  { %v2125_v20 = vadd.f32 %v5039_v19, %v1710_v58  ;;  %v2310_v19 = vld [vmem:[%s6304_s19 + $0x28] sm:$0xff] }
 0xf5d   :  { %v2115_v22 = vpop.f32.mrf.mxu1  ;;  %5071 = vmatprep.subr.mxu1 %v2310_v19 }
 0xf5e   :  { %v2127_v23 = vadd.f32 %v2125_v20, %v5655_v59  ;;  %v2124_v24 = vadd.f32 %v2115_v22, %v1709_v61  ;;  %v2309_v20 = vld [vmem:[%s6304_s19 + $0x20] sm:$0xff]  ;;  %5072 = vmatpush3.msra.mxu1 %v2310_v19  ;;  %v2307_v22 = vld [vmem:[%s6304_s19 + $0x10] sm:$0xff] }
 0xf5f   :  { %5073 = vmatprep.subr.mxu1 %v2309_v20 }
 0xf60   :  { %v5875_v25 = vadd.f32 %v4624_v21, %v2127_v23  ;;  %v2126_v26 = vadd.f32 %v2124_v24, %v5651_v56  ;;  %5074 = vmatpush3.msra.mxu1 %v2309_v20  ;;  %v2306_v23 = vld [vmem:[%s6304_s19 + $0x8] sm:$0xff]  ;;  %v2305_v24 = vld [vmem:[%s6304_s19] sm:$0xff] }
 0xf62   :  { %v5878_v27 = vadd.f32 %v4624_v21, %v2126_v26  ;;  %v2142_v28 = vsel %vm87_vm1, %v5875_v25, 0.0  ;;  %v2308_v21 = vld [vmem:[%s6304_s19 + $0x18] sm:$0xff]  ;;  %v4627_v26 = vld [vmem:[%s6303_s18] ss:$0 sm:$0xff] }
 0xf63   :  { %2143 = vadd.xlane.f32.xlu0 %v2142_v28  ;;  %5075 = vmatprep.subr.mxu1 %v2308_v21 }
 0xf64   :  { %v2139_v29 = vsel %vm87_vm1, %v5878_v27, 0.0  ;;  %5076 = vmatpush3.msra.mxu1 %v2308_v21 }
 0xf65   :  { %2140 = vadd.xlane.f32.xlu1 %v2139_v29  ;;  %5077 = vmatprep.subr.mxu1 %v2307_v22 }
 0xf66   :  { %5078 = vmatpush3.msra.mxu1 %v2307_v22 }
 0xf67   :  { %5079 = vmatprep.subr.mxu1 %v2306_v23 }
 0xf68   :  { %5080 = vmatpush3.msra.mxu1 %v2306_v23 }
 0xf69   :  { %5081 = vmatprep.subr.mxu1 %v2305_v24 }
 0xf6a   :  { %5082 = vmatpush3.msra.mxu1 %v2305_v24 }
 0xf6b   :  { %5122 = vmatprep.subr.mxu1 %v5401_v1 }
 0xfec   :  { %v2144_v30 = vpop.xlane.xlu0 %2143 }
 0xfed   :  { %v2146_v31 = vmul.f32 0.03125, %v2144_v30 }
 0xfee   :  { %v2141_v32 = vpop.xlane.xlu1 %2140 }
 0xfef   :  { %v2148_v59 = vsub.f32 %v5875_v25, %v2146_v31  ;;  %v2145_v33 = vmul.f32 0.03125, %v2141_v32 }
 0xff1   :  { %v2147_v34 = vsub.f32 %v5878_v27, %v2145_v33  ;;  %v2150_v35 = vmul.f32 %v2148_v59, %v2148_v59 }
 0xff3   :  { %v2154_v56 = vsel %vm87_vm1, %v2150_v35, 0.0  ;;  %v2149_v36 = vmul.f32 %v2147_v34, %v2147_v34 }
 0xff4   :  { %2155 = vadd.xlane.f32.xlu1 %v2154_v56 }
 0xff5   :  { %v2151_v37 = vsel %vm87_vm1, %v2149_v36, 0.0 }
 0xff6   :  { %2152 = vadd.xlane.f32.xlu0 %v2151_v37 }
0x107d   :  { %v2156_v44 = vpop.xlane.xlu1 %2155 }
0x107e   :  { %v2158_v45 = vmul.f32 0.03125, %v2156_v44 }
0x107f   :  { %v2153_v46 = vpop.xlane.xlu0 %2152 }
0x1080   :  { %v2160_v47 = vadd.f32 1e-12, %v2158_v45  ;;  %v2157_v49 = vmul.f32 0.03125, %v2153_v46 }
0x1082   :  { %5307 = vrsqrt.f32 %v2160_v47  ;;  %v2159_v50 = vadd.f32 1e-12, %v2157_v49  ;;  %vm2170_vm7 = vcmp.eq.f32.partialorder %v2160_v47, inf  ;;  %v2173_v54 = vand.u32 2147483648, %v2160_v47 }
0x1083   :  { %vm2172_vm8 = vcmp.eq.f32.partialorder %v2160_v47, 0.0 }
0x1084   :  { %5309 = vrsqrt.f32 %v2159_v50  ;;  %vm2163_vm9 = vcmp.eq.f32.partialorder %v2159_v50, inf  ;;  %v2166_v61 = vand.u32 2147483648, %v2159_v50  ;;  %vm2165_vm10 = vcmp.eq.f32.partialorder %v2159_v50, 0.0 }
0x108f   :  { %v5308_v51 = vpop.eup %5307 }
0x1090   :  { %v2169_v52 = vmul.f32 %v5308_v51, %v2160_v47 }
0x1091   :  { %v5310_v55 = vpop.eup %5309 }
0x1092   :  { %v2171_v57 = vsel %vm2170_vm7, %v2160_v47, %v2169_v52  ;;  %v2162_v60 = vmul.f32 %v5310_v55, %v2159_v50  ;;  %v4630_v52 = vld [vmem:[%s6305_s20] ss:$0 sm:$0xff] }
0x1093   :  { %v2174_v58 = vsel %vm2172_vm8, %v2173_v54, %v2171_v57 }
0x1094   :  { %5311 = vrcp.f32 %v2174_v58  ;;  %v2164_v62 = vsel %vm2163_vm9, %v2159_v50, %v2162_v60 }
0x1095   :  { %v2167_v63 = vsel %vm2165_vm10, %v2166_v61, %v2164_v62 }
0x1096   :  { %5313 = vrcp.f32 %v2167_v63 }
0x10a1   :  { %v5312_v0 = vpop.eup %5311 }
0x10a2   :  { %v2178_v2 = vmul.f32 %v5312_v0, %v2148_v59 }
0x10a3   :  { %v5314_v4 = vpop.eup %5313 }
0x10a4   :  { %v2176_v5 = vmul.f32 %v5314_v4, %v2147_v34  ;;  %v2186_v6 = vmul.f32 %v4625_v3, %v2178_v2 }
0x10a6   :  { %v2185_v8 = vmul.f32 %v4625_v3, %v2176_v5  ;;  %v2194_v10 = vadd.f32 %v4626_v7, %v2186_v6 }
0x10a8   :  { %v2193_v9 = vadd.f32 %v4626_v7, %v2185_v8  ;;  %v4638_v8 = vld [vmem:[%s6296_s11 + $0x38] sm:$0xff] }
0x10a9   :  { %5086 = vmatprep.subr.mxu0 %v4638_v8 }
0x10aa   :  { %5048 = vmatprep.mubr.msk.f32.mxu0 %vm87_vm1, %v2193_v9  ;;  %v4637_v9 = vld [vmem:[%s6296_s11 + $0x30] sm:$0xff] }
0x10ab   :  { %5049 = vmatmul.mubr.msk.f32.vlgmr.msra.gmra.mxu0 %vm87_vm1, %v2194_v10  ;;  %v4636_v10 = vld [vmem:[%s6296_s11 + $0x28] sm:$0xff] }
0x10ac   :  { %5087 = vmatpush3.msra.mxu0 %v4638_v8 }
0x10ad   :  { %5088 = vmatprep.subr.mxu0 %v4637_v9 }
0x10ae   :  { %5089 = vmatpush3.msra.mxu0 %v4637_v9 }
0x10af   :  { %5090 = vmatprep.subr.mxu0 %v4636_v10 }
0x10b0   :  { %5091 = vmatpush3.msra.mxu0 %v4636_v10 }
0x10b1   :  { %5092 = vmatprep.subr.mxu0 %v4635_v11 }
0x10b2   :  { %5093 = vmatpush3.msra.mxu0 %v4635_v11 }
0x10b3   :  { %5097 = vmatprep.subr.mxu0 %v5401_v1 }
0x116b   :  { %v5050_v28 = vpop.f32.mrf.mxu0 }
0x116c   :  { %v2284_v29 = vadd.f32 %v5050_v28, %v4627_v26 }
0x116d   :  { %v2278_v30 = vpop.f32.mrf.mxu0 }
0x116e   :  { %v2290_v31 = vmul.f32 0.044715, %v2284_v29  ;;  %v2279_v32 = vadd.f32 %v4627_v26, %v2278_v30  ;;  %v2288_v47 = vmul.f32 0.5, %v2284_v29  ;;  %v4633_v30 = vld [vmem:[%s6294_s9 + $0x1] ss:$0 sm:$0xff] }
0x1170   :  { %v2292_v59 = vmul.f32 %v2290_v31, %v2284_v29  ;;  %v2289_v33 = vmul.f32 0.044715, %v2279_v32  ;;  %v2287_v45 = vmul.f32 0.5, %v2279_v32 }
0x1172   :  { %v2294_v34 = vmul.f32 %v2292_v59, %v2284_v29  ;;  %v2291_v35 = vmul.f32 %v2289_v33, %v2279_v32  ;;  %v4634_v33 = vld [vmem:[%s6295_s10 + $0x1] ss:$0 sm:$0xff] }
0x1174   :  { %v2296_v56 = vadd.f32 %v2294_v34, %v2284_v29  ;;  %v2293_v36 = vmul.f32 %v2291_v35, %v2279_v32 }
0x1176   :  { %v2295_v37 = vadd.f32 %v2293_v36, %v2279_v32  ;;  %v2298_v38 = vmul.f32 0.7978846, %v2296_v56  ;;  %v4640_v36 = vld [vmem:[%s6297_s12 + $0x1] ss:$0 sm:$0xff] }
0x1178   :  { %v2297_v39 = vmul.f32 0.7978846, %v2295_v37  ;;  %5315 = vtanh.f32 %v2298_v38 }
0x117a   :  { %5317 = vtanh.f32 %v2297_v39 }
0x1185   :  { %v5316_v40 = vpop.eup %5315 }
0x1186   :  { %v2302_v44 = vadd.f32 1.0, %v5316_v40 }
0x1187   :  { %v5318_v42 = vpop.eup %5317 }
0x1188   :  { %v2301_v46 = vadd.f32 1.0, %v5318_v42  ;;  %v2304_v50 = vmul.f32 %v2302_v44, %v2288_v47 }
0x118a   :  { %v2303_v49 = vmul.f32 %v2301_v46, %v2287_v45 }
0x118c   :  { %5083 = vmatprep.mubr.f32.mxu1 %v2303_v49 }
0x118d   :  { %5084 = vmatmul.mubr.f32.vlgmr.msra.gmra.mxu1 %v2304_v50 }
0x118e   :  { %5124 = vmatprep.mubr.msk.f32.mxu1 %vm5402_vm0, %v5401_v1 }
0x124d   :  { %v5085_v51 = vpop.f32.mrf.mxu1 }
0x124e   :  { %v2397_v54 = vadd.f32 %v5085_v51, %v5875_v25 }
0x124f   :  { %v2387_v55 = vpop.f32.mrf.mxu1 }
0x1250   :  { %v5966_v57 = vadd.f32 %v4630_v52, %v2397_v54  ;;  %v2396_v58 = vadd.f32 %v2387_v55, %v5878_v27 }
0x1252   :  { %v5969_v60 = vadd.f32 %v4630_v52, %v2396_v58  ;;  %v2414_v61 = vsel %vm87_vm1, %v5966_v57, 0.0 }
0x1253   :  { %2415 = vadd.xlane.f32.xlu1 %v2414_v61 }
0x1254   :  { %v2411_v62 = vsel %vm87_vm1, %v5969_v60, 0.0 }
0x1255   :  { %2412 = vadd.xlane.f32.xlu0 %v2411_v62 }
0x12dc   :  { %v2416_v63 = vpop.xlane.xlu1 %2415 }
0x12dd   :  { %v2418_v0 = vmul.f32 0.03125, %v2416_v63 }
0x12de   :  { %v2413_v2 = vpop.xlane.xlu0 %2412 }
0x12df   :  { %v2420_v25 = vsub.f32 %v5966_v57, %v2418_v0  ;;  %v2417_v3 = vmul.f32 0.03125, %v2413_v2 }
0x12e1   :  { %v2419_v4 = vsub.f32 %v5969_v60, %v2417_v3  ;;  %v2422_v5 = vmul.f32 %v2420_v25, %v2420_v25 }
0x12e3   :  { %v2426_v27 = vsel %vm87_vm1, %v2422_v5, 0.0  ;;  %v2421_v6 = vmul.f32 %v2419_v4, %v2419_v4 }
0x12e4   :  { %2427 = vadd.xlane.f32.xlu1 %v2426_v27 }
0x12e5   :  { %v2423_v7 = vsel %vm87_vm1, %v2421_v6, 0.0 }
0x12e6   :  { %2424 = vadd.xlane.f32.xlu0 %v2423_v7 }
0x136d   :  { %v2428_v12 = vpop.xlane.xlu1 %2427 }
0x136e   :  { %v2430_v41 = vmul.f32 0.03125, %v2428_v12 }
0x136f   :  { %v2425_v13 = vpop.xlane.xlu0 %2424 }
0x1370   :  { %v2432_v14 = vadd.f32 1e-12, %v2430_v41  ;;  %v2429_v15 = vmul.f32 0.03125, %v2425_v13 }
0x1372   :  { %5319 = vrsqrt.f32 %v2432_v14  ;;  %v2431_v43 = vadd.f32 1e-12, %v2429_v15  ;;  %vm2442_vm11 = vcmp.eq.f32.partialorder %v2432_v14, inf  ;;  %v2445_v18 = vand.u32 2147483648, %v2432_v14 }
0x1373   :  { %vm2444_vm12 = vcmp.eq.f32.partialorder %v2432_v14, 0.0 }
0x1374   :  { %5321 = vrsqrt.f32 %v2431_v43  ;;  %vm2435_vm13 = vcmp.eq.f32.partialorder %v2431_v43, inf  ;;  %v2438_v23 = vand.u32 2147483648, %v2431_v43  ;;  %vm2437_vm14 = vcmp.eq.f32.partialorder %v2431_v43, 0.0 }
0x137f   :  { %v5320_v16 = vpop.eup %5319 }
0x1380   :  { %v2441_v17 = vmul.f32 %v5320_v16, %v2432_v14 }
0x1381   :  { %v5322_v19 = vpop.eup %5321 }
0x1382   :  { %v2443_v20 = vsel %vm2442_vm11, %v2432_v14, %v2441_v17  ;;  %v2434_v22 = vmul.f32 %v5322_v19, %v2431_v43 }
0x1383   :  { %v2446_v21 = vsel %vm2444_vm12, %v2445_v18, %v2443_v20 }
0x1384   :  { %5323 = vrcp.f32 %v2446_v21  ;;  %v2436_v24 = vsel %vm2435_vm13, %v2431_v43, %v2434_v22 }
0x1385   :  { %v2439_v26 = vsel %vm2437_vm14, %v2438_v23, %v2436_v24 }
0x1386   :  { %5325 = vrcp.f32 %v2439_v26 }
0x1391   :  { %v5324_v28 = vpop.eup %5323 }
0x1392   :  { %v2450_v29 = vmul.f32 %v5324_v28, %v2420_v25 }
0x1393   :  { %v5326_v31 = vpop.eup %5325 }
0x1394   :  { %v2448_v32 = vmul.f32 %v5326_v31, %v2419_v4  ;;  %v2458_v59 = vmul.f32 %v4633_v30, %v2450_v29 }
0x1396   :  { %v2457_v34 = vmul.f32 %v4633_v30, %v2448_v32  ;;  %v2466_v56 = vadd.f32 %v4634_v33, %v2458_v59 }
0x1398   :  { %v2465_v35 = vadd.f32 %v4634_v33, %v2457_v34 }
0x139a   :  { %5094 = vmatprep.mubr.msk.f32.mxu0 %vm87_vm1, %v2465_v35 }
0x139b   :  { %5095 = vmatmul.mubr.msk.f32.vlgmr.msra.gmra.mxu0 %vm87_vm1, %v2466_v56 }
0x139c   :  { %5099 = vmatprep.mubr.msk.f32.mxu0 %vm5402_vm0, %v5401_v1 }
0x145b   :  { %v5096_v37 = vpop.f32.mrf.mxu0 }
0x145c   :  { %v6005_v38 = vadd.f32 %v5096_v37, %v4640_v36  ;;  %v4643_v37 = vld [vmem:[%s6298_s13 + $0x20] sm:$0xff] }
0x145d   :  { %v2552_v39 = vpop.f32.mrf.mxu0 }
0x145e   :  { %v6007_v40 = vadd.f32 %v4640_v36, %v2552_v39  ;;  %2644 = vrot.lane.b32.xlu1 %v6005_v38, %s5405_s24 }
0x1460   :  { %2567 = vrot.lane.b32.xlu0 %v6007_v40, %s5405_s24 }
0x14d0   :  { %v2645_v44 = vpop.permute.xlu1 %2644 }
0x14d2   :  { %v2568_v42 = vpop.permute.xlu0 %2567 }
0x14d3   :  { %5098 = vmatpush3.xpose.msk.msra.mxu0 %vm464_vm6, %v2568_v42 }
0x14d4   :  { %5102 = vmatprep.subr.mxu0 %v5401_v1 }
0x14d6   :  { %5100 = vmatmul.mubr.msk.f32.vlgmr.msra.gmra.mxu0 %vm464_vm6, %v6007_v40 }
0x14d7   :  { %5103 = vmatpush3.xpose.msk.msra.mxu0 %vm464_vm6, %v2645_v44  ;;  %5104 = vmatprep.mubr.msk.f32.mxu0 %vm5402_vm0, %v5401_v1 }
0x14d8   :  { %5107 = vmatprep.subr.mxu0 %v5401_v1 }
0x14da   :  { %5105 = vmatmul.mubr.msk.f32.vlgmr.msra.gmra.mxu0 %vm464_vm6, %v6005_v38 }
0x14db   :  { %5109 = vmatprep.mubr.msk.f32.mxu0 %vm5402_vm0, %v5401_v1 }
0x1596   :  { %v2639_v45 = vpop.f32.mrf.mxu0 }
0x1597   :  { %v2720_v46 = vmul.f32 %v2639_v45, %v5715_v48 }
0x1598   :  { %v5101_v47 = vpop.f32.mrf.mxu0 }
0x1599   :  { %v2722_v49 = vsel %vm464_vm6, %v2720_v46, -inf }
0x159a   :  { %2723 = vmax.xlane.f32.xlu1 %v2722_v49  ;;  %v2716_v50 = vpop.f32.mrf.mxu0 }
0x159b   :  { %v2721_v51 = vmul.f32 %v2716_v50, %v5719_v53 }
0x159c   :  { %v5106_v52 = vpop.f32.mrf.mxu0 }
0x159d   :  { %v2725_v54 = vsel %vm464_vm6, %v2721_v51, -inf }
0x159e   :  { %2726 = vmax.xlane.f32.xlu0 %v2725_v54  ;;  %v4644_v54 = vld [vmem:[%s6298_s13 + $0x28] sm:$0xff] }
0x15ab   :  { %2820 = vrot.lane.b32.xlu1 %v6005_v38, %s5406_s2 }
0x15af   :  { %2898 = vrot.lane.b32.xlu1 %v6007_v40, %s5407_s6 }
0x15b3   :  { %2976 = vrot.lane.b32.xlu1 %v6005_v38, %s5407_s6  ;;  %s6337_s6 = smov 104  }
0x1623   :  { %v2724_v55 = vpop.xlane.xlu1 %2723 }
0x1624   :  { %v2728_v58 = vsub.f32 %v2720_v46, %v2724_v55 }
0x1626   :  { %v2730_v61 = vmul.f32 1.442695, %v2728_v58 }
0x1627   :  { %v2821_v62 = vpop.permute.xlu1 %2820  ;;  %v2727_v63 = vpop.xlane.xlu0 %2726 }
0x1628   :  { %5327 = vpow2.f32 %v2730_v61  ;;  %v2729_v0 = vsub.f32 %v2721_v51, %v2727_v63 }
0x162a   :  { %v2732_v2 = vmul.f32 1.442695, %v2729_v0 }
0x162b   :  { %v2899_v25 = vpop.permute.xlu1 %2898 }
0x162c   :  { %5329 = vpow2.f32 %v2732_v2 }
0x162f   :  { %v2977_v3 = vpop.permute.xlu1 %2976 }
0x1630   :  { %5123 = vmatpush3.xpose.msk.msra.mxu1 %vm464_vm6, %v2977_v3 }
0x1631   :  { %5132 = vmatprep.subr.mxu1 %v5401_v1 }
0x1635   :  { %v5328_v4 = vpop.eup %5327 }
0x1636   :  { %v2734_v5 = vsel %vm464_vm6, %v5328_v4, 0.0 }
0x1637   :  { %2735 = vadd.xlane.f32.xlu0 %v2734_v5 }
0x1639   :  { %v5330_v27 = vpop.eup %5329 }
0x163a   :  { %v2737_v6 = vsel %vm464_vm6, %v5330_v27, 0.0 }
0x163b   :  { %2738 = vadd.xlane.f32.xlu1 %v2737_v6 }
0x164c   :  { %2974 = vrot.lane.b32.xlu1 %v6005_v38, %s5408_s27 }
0x164d   :  { %2744 = vrot.lane.b32.xlu0 %v6007_v40, %s5406_s2  ;;  %s6336_s2 = smov 72  }
0x1651   :  { %2896 = vrot.lane.b32.xlu0 %v6007_v40, %s5408_s27 }
0x16c0   :  { %v2736_v7 = vpop.xlane.xlu0 %2735 }
0x16c1   :  { %5331 = vrcp.f32 %v2736_v7 }
0x16c4   :  { %v2739_v8 = vpop.xlane.xlu1 %2738  ;;  %v2745_v9 = vpop.permute.xlu0 %2744 }
0x16c5   :  { %5333 = vrcp.f32 %v2739_v8  ;;  %5108 = vmatpush3.msra.mxu0 %v2745_v9 }
0x16c6   :  { %5112 = vmatprep.subr.mxu0 %v5401_v1 }
0x16c8   :  { %v2975_v10 = vpop.permute.xlu1 %2974  ;;  %v2897_v14 = vpop.permute.xlu0 %2896 }
0x16c9   :  { %5125 = vmatmul.mubr.msk.f32.vlgmr.msra.gmra.mxu1 %vm464_vm6, %v2975_v10 }
0x16ca   :  { %5134 = vmatprep.mubr.msk.f32.mxu1 %vm5402_vm0, %v5401_v1 }
0x16ce   :  { %v5332_v11 = vpop.eup %5331 }
0x16cf   :  { %v2741_v12 = vmul.f32 %v5332_v11, %v5328_v4 }
0x16d1   :  { %5110 = vmatmul.mubr.msk.f32.vlgmr.msra.gmra.mxu0 %vm464_vm6, %v2741_v12 }
0x16d2   :  { %v5334_v41 = vpop.eup %5333  ;;  %5113 = vmatpush3.msra.mxu0 %v2821_v62  ;;  %5114 = vmatprep.mubr.msk.f32.mxu0 %vm5402_vm0, %v5401_v1 }
0x16d3   :  { %5117 = vmatprep.subr.mxu0 %v5401_v1  ;;  %v2743_v13 = vmul.f32 %v5334_v41, %v5330_v27 }
0x16d5   :  { %5115 = vmatmul.mubr.msk.f32.vlgmr.msra.gmra.mxu0 %vm464_vm6, %v2743_v13 }
0x16d6   :  { %5118 = vmatpush3.xpose.msk.msra.mxu0 %vm464_vm6, %v2899_v25  ;;  %5119 = vmatprep.mubr.msk.f32.mxu0 %vm5402_vm0, %v5401_v1 }
0x16d7   :  { %5127 = vmatprep.subr.mxu0 %v5401_v1 }
0x16d9   :  { %5120 = vmatmul.mubr.msk.f32.vlgmr.msra.gmra.mxu0 %vm464_vm6, %v2897_v14 }
0x16da   :  { %5129 = vmatprep.mubr.msk.f32.mxu0 %vm5402_vm0, %v5401_v1 }
0x1789   :  { %v3048_v15 = vpop.f32.mrf.mxu1 }
0x178a   :  { %v3053_v43 = vmul.f32 %v3048_v15, %v5719_v53 }
0x178b   :  { %v5126_v16 = vpop.f32.mrf.mxu1 }
0x178c   :  { %v3057_v17 = vsel %vm464_vm6, %v3053_v43, -inf }
0x178d   :  { %3058 = vmax.xlane.f32.xlu1 %v3057_v17 }
0x1791   :  { %v2816_v18 = vpop.f32.mrf.mxu0 }
0x1793   :  { %v5111_v19 = vpop.f32.mrf.mxu0 }
0x1795   :  { %v2892_v20 = vpop.f32.mrf.mxu0 }
0x1797   :  { %v5116_v21 = vpop.f32.mrf.mxu0 }
0x1799   :  { %v2970_v22 = vpop.f32.mrf.mxu0 }
0x179a   :  { %v3052_v23 = vmul.f32 %v2970_v22, %v5715_v48 }
0x179b   :  { %v5121_v24 = vpop.f32.mrf.mxu0 }
0x179c   :  { %v3054_v26 = vsel %vm464_vm6, %v3052_v23, -inf }
0x179d   :  { %3055 = vmax.xlane.f32.xlu0 %v3054_v26 }
0x179e   :  { %3152 = vrot.lane.b32.xlu1 %v6005_v38, %s5409_s7 }
0x17a2   :  { %3392 = vrot.lane.b32.xlu1 %v6007_v40, %s5410_s28 }
0x17a6   :  { %3470 = vrot.lane.b32.xlu1 %v6005_v38, %s5410_s28  ;;  %s6338_s28 = smov 40  }
0x17aa   :  { %3468 = vrot.lane.b32.xlu1 %v6005_v38, %s5411_s8 }
0x1816   :  { %v3059_v28 = vpop.xlane.xlu1 %3058 }
0x1817   :  { %v3061_v29 = vsub.f32 %v3053_v43, %v3059_v28 }
0x1819   :  { %v3064_v30 = vmul.f32 1.442695, %v3061_v29 }
0x181a   :  { %v3153_v31 = vpop.permute.xlu1 %3152 }
0x181b   :  { %5335 = vpow2.f32 %v3064_v30  ;;  %5133 = vmatpush3.msra.mxu1 %v3153_v31 }
0x181c   :  { %5142 = vmatprep.subr.mxu1 %v4643_v37 }
0x181e   :  { %v3393_v42 = vpop.permute.xlu1 %3392 }
0x1822   :  { %v3471_v47 = vpop.permute.xlu1 %3470 }
0x1826   :  { %v3056_v32 = vpop.xlane.xlu0 %3055  ;;  %v3469_v50 = vpop.permute.xlu1 %3468 }
0x1827   :  { %v3060_v59 = vsub.f32 %v3052_v23, %v3056_v32 }
0x1828   :  { %v5336_v33 = vpop.eup %5335 }
0x1829   :  { %v3062_v34 = vmul.f32 1.442695, %v3060_v59  ;;  %v3069_v35 = vsel %vm464_vm6, %v5336_v33, 0.0  ;;  %v4645_v59 = vld [vmem:[%s6298_s13 + $0x30] sm:$0xff] }
0x182a   :  { %3070 = vadd.xlane.f32.xlu0 %v3069_v35 }
0x182b   :  { %5337 = vpow2.f32 %v3062_v34 }
0x1838   :  { %v5338_v56 = vpop.eup %5337 }
0x1839   :  { %v3066_v36 = vsel %vm464_vm6, %v5338_v56, 0.0 }
0x183a   :  { %3067 = vadd.xlane.f32.xlu0 %v3066_v36 }
0x1850   :  { %3076 = vrot.lane.b32.xlu0 %v6007_v40, %s5409_s7 }
0x1854   :  { %3390 = vrot.lane.b32.xlu0 %v6007_v40, %s5411_s8 }
0x18b3   :  { %v3071_v39 = vpop.xlane.xlu0 %3070 }
0x18b4   :  { %5339 = vrcp.f32 %v3071_v39 }
0x18c1   :  { %v5340_v44 = vpop.eup %5339 }
0x18c2   :  { %v3075_v45 = vmul.f32 %v5340_v44, %v5336_v33 }
0x18c3   :  { %v3068_v46 = vpop.xlane.xlu0 %3067 }
0x18c4   :  { %5341 = vrcp.f32 %v3068_v46  ;;  %5135 = vmatmul.mubr.msk.f32.vlgmr.msra.gmra.mxu1 %vm464_vm6, %v3075_v45 }
0x18c5   :  { %5144 = vmatprep.mubr.msk.f32.mxu1 %vm464_vm6, %v2816_v18  ;;  %5143 = vmatpush3.msra.mxu1 %v4643_v37 }
0x18c6   :  { %5152 = vmatprep.subr.mxu1 %v5401_v1 }
0x18c7   :  { %v3077_v49 = vpop.permute.xlu0 %3076 }
0x18c8   :  { %5128 = vmatpush3.msra.mxu0 %v3077_v49  ;;  %5145 = vmatmul.mubr.msk.f32.vlgmr.msra.gmra.mxu1 %vm464_vm6, %v2892_v20 }
0x18c9   :  { %5153 = vmatpush3.xpose.msk.msra.mxu1 %vm464_vm6, %v3471_v47  ;;  %5154 = vmatprep.mubr.msk.f32.mxu1 %vm5402_vm0, %v5401_v1 }
0x18ca   :  { %5162 = vmatprep.subr.mxu1 %v5401_v1  ;;  %5137 = vmatprep.subr.mxu0 %v4644_v54 }
0x18cb   :  { %v3391_v5 = vpop.permute.xlu0 %3390 }
0x18cc   :  { %5155 = vmatmul.mubr.msk.f32.vlgmr.msra.gmra.mxu1 %vm464_vm6, %v3469_v50 }
0x18cd   :  { %5164 = vmatprep.mubr.msk.f32.mxu1 %vm5402_vm0, %v5401_v1 }
0x18d1   :  { %v5342_v51 = vpop.eup %5341 }
0x18d2   :  { %v3073_v52 = vmul.f32 %v5342_v51, %v5338_v56 }
0x18d4   :  { %5130 = vmatmul.mubr.msk.f32.vlgmr.msra.gmra.mxu0 %vm464_vm6, %v3073_v52 }
0x18d5   :  { %5138 = vmatpush3.msra.mxu0 %v4644_v54 }
0x18d6   :  { %5147 = vmatprep.subr.mxu0 %v5401_v1 }
0x1984   :  { %v3224_v55 = vpop.f32.mrf.mxu1 }
0x1986   :  { %v5136_v58 = vpop.f32.mrf.mxu1 }
0x1988   :  { %v6098_v61 = vpop.f32.mrf.mxu1 }
0x198a   :  { %v6100_v62 = vpop.f32.mrf.mxu1 }
0x198c   :  { %v3542_v63 = vpop.f32.mrf.mxu1 }
0x198d   :  { %v3547_v0 = vmul.f32 %v3542_v63, %v5719_v53 }
0x198e   :  { %v5156_v2 = vpop.f32.mrf.mxu1 }
0x198f   :  { %v3551_v25 = vsel %vm464_vm6, %v3547_v0, -inf }
0x1990   :  { %3552 = vmax.xlane.f32.xlu1 %v3551_v25 }
0x1994   :  { %v3148_v3 = vpop.f32.mrf.mxu0 }
0x1995   :  { %5139 = vmatprep.mubr.msk.f32.mxu0 %vm464_vm6, %v3148_v3 }
0x1996   :  { %v5131_v4 = vpop.f32.mrf.mxu0  ;;  %5140 = vmatmul.mubr.msk.f32.vlgmr.msra.gmra.mxu0 %vm464_vm6, %v3224_v55 }
0x1997   :  { %5148 = vmatpush3.xpose.msk.msra.mxu0 %vm464_vm6, %v3393_v42  ;;  %5149 = vmatprep.mubr.msk.f32.mxu0 %vm5402_vm0, %v5401_v1 }
0x1998   :  { %5157 = vmatprep.subr.mxu0 %v5401_v1 }
0x199a   :  { %5150 = vmatmul.mubr.msk.f32.vlgmr.msra.gmra.mxu0 %vm464_vm6, %v3391_v5 }
0x199b   :  { %5159 = vmatprep.mubr.msk.f32.mxu0 %vm5402_vm0, %v5401_v1 }
0x19a1   :  { %3646 = vrot.lane.b32.xlu1 %v6005_v38, %s5412_s29 }
0x19a5   :  { %3807 = vrot.lane.b32.xlu1 %v6007_v40, %s6336_s2 }
0x19a9   :  { %3885 = vrot.lane.b32.xlu1 %v6005_v38, %s6336_s2 }
0x19ad   :  { %3883 = vrot.lane.b32.xlu1 %v6005_v38, %s6337_s6 }
0x1a19   :  { %v3553_v27 = vpop.xlane.xlu1 %3552 }
0x1a1a   :  { %v3555_v7 = vsub.f32 %v3547_v0, %v3553_v27 }
0x1a1c   :  { %v3558_v8 = vmul.f32 1.442695, %v3555_v7 }
0x1a1d   :  { %v3647_v6 = vpop.permute.xlu1 %3646 }
0x1a1e   :  { %5163 = vmatpush3.msra.mxu1 %v3647_v6  ;;  %5343 = vpow2.f32 %v3558_v8 }
0x1a1f   :  { %5172 = vmatprep.subr.mxu1 %v5401_v1 }
0x1a21   :  { %v3808_v23 = vpop.permute.xlu1 %3807 }
0x1a25   :  { %v3886_v36 = vpop.permute.xlu1 %3885 }
0x1a29   :  { %v3884_v42 = vpop.permute.xlu1 %3883 }
0x1a2b   :  { %v5344_v14 = vpop.eup %5343 }
0x1a2c   :  { %v3563_v15 = vsel %vm464_vm6, %v5344_v14, 0.0 }
0x1a56   :  { %v6122_v9 = vpop.f32.mrf.mxu0 }
0x1a57   :  { %v3387_v49 = vadd.f32 %v6098_v61, %v6122_v9  ;;  %v4646_v9 = vld [vmem:[%s6298_s13 + $0x38] sm:$0xff]  ;;  %s4573_s13 = sshll.u32 %s5416_s5, 4  ;;  %s4574_s13 = int_to_ptr.vmem [resolvable:$true] %s4573_s13 }
0x1a58   :  { %v6124_v10 = vpop.f32.mrf.mxu0  ;;  %p5384_p1 = scmp.lt.s32.totalorder %s4574_s13, %s4574_s13 }
0x1a59   :  { %v3382_v51 = vadd.f32 %v6100_v62, %v6124_v10 }
0x1a5a   :  { %v3464_v11 = vpop.f32.mrf.mxu0 }
0x1a5b   :  { %v3546_v12 = vmul.f32 %v3464_v11, %v5715_v48 }
0x1a5c   :  { %v5151_v41 = vpop.f32.mrf.mxu0 }
0x1a5d   :  { %v3548_v13 = vsel %vm464_vm6, %v3546_v12, -inf }
0x1a5e   :  { %3549 = vmax.xlane.f32.xlu0 %v3548_v13 }
0x1a62   :  { %3564 = vadd.xlane.f32.xlu0 %v3563_v15 }
0x1ae7   :  { %v3550_v43 = vpop.xlane.xlu0 %3549 }
0x1ae8   :  { %v3554_v16 = vsub.f32 %v3546_v12, %v3550_v43 }
0x1aea   :  { %v3556_v17 = vmul.f32 1.442695, %v3554_v16 }
0x1aeb   :  { %v3565_v18 = vpop.xlane.xlu0 %3564 }
0x1aec   :  { %5345 = vpow2.f32 %v3556_v17 }
0x1aed   :  { %5347 = vrcp.f32 %v3565_v18 }
0x1af9   :  { %v5346_v19 = vpop.eup %5345 }
0x1afa   :  { %v5348_v20 = vpop.eup %5347  ;;  %v3560_v21 = vsel %vm464_vm6, %v5346_v19, 0.0 }
0x1afb   :  { %3561 = vadd.xlane.f32.xlu0 %v3560_v21  ;;  %v3569_v22 = vmul.f32 %v5348_v20, %v5344_v14  ;;  %v4680_v14 = vld [vmem:[%s6299_s14 + $0x1] ss:$0 sm:$0xff]  ;;  %s5379_s14 = scalar_lea.vmem %s4574_s13, 256 }
0x1afc   :  { %p5380_p0 = scmp.ne.s32.totalorder %s4574_s13, %s5379_s14  ;;  %p5385_p2 = scmp.lt.s32.totalorder %s5379_s14, %s5379_s14 }
0x1afd   :  { %5165 = vmatmul.mubr.msk.f32.vlgmr.msra.gmra.mxu1 %vm464_vm6, %v3569_v22 }
0x1afe   :  { %5173 = vmatpush3.xpose.msk.msra.mxu1 %vm464_vm6, %v3808_v23  ;;  %5174 = vmatprep.mubr.msk.f32.mxu1 %vm5402_vm0, %v5401_v1  ;;  %p5386_p3 = por %p5385_p2, %p5384_p1 }
0x1aff   :  { %5182 = vmatprep.subr.mxu1 %v5401_v1 }
0x1b00   :  { %p5387_p4 = pnand %p5386_p3, %p5380_p0 }
0x1b11   :  { %3570 = vrot.lane.b32.xlu0 %v6007_v40, %s5412_s29 }
0x1b15   :  { %3805 = vrot.lane.b32.xlu0 %v6007_v40, %s6337_s6 }
0x1b84   :  { %v3562_v24 = vpop.xlane.xlu0 %3561 }
0x1b85   :  { %5349 = vrcp.f32 %v3562_v24 }
0x1b88   :  { %v3571_v26 = vpop.permute.xlu0 %3570 }
0x1b89   :  { %5158 = vmatpush3.msra.mxu0 %v3571_v26 }
0x1b8a   :  { %5167 = vmatprep.subr.mxu0 %v4645_v59 }
0x1b8c   :  { %v3806_v28 = vpop.permute.xlu0 %3805 }
0x1b8d   :  { %5175 = vmatmul.mubr.msk.f32.vlgmr.msra.gmra.mxu1 %vm464_vm6, %v3806_v28 }
0x1b8e   :  { %5184 = vmatprep.mubr.msk.f32.mxu1 %vm5402_vm0, %v5401_v1 }
0x1b92   :  { %v5350_v29 = vpop.eup %5349 }
0x1b93   :  { %v3567_v30 = vmul.f32 %v5350_v29, %v5346_v19 }
0x1b95   :  { %5160 = vmatmul.mubr.msk.f32.vlgmr.msra.gmra.mxu0 %vm464_vm6, %v3567_v30 }
0x1b96   :  { %5168 = vmatpush3.msra.mxu0 %v4645_v59  ;;  %v4687_v59 = vld [vmem:[%s6302_s17 + $0x30] sm:$0xff] }
0x1b97   :  { %5177 = vmatprep.subr.mxu0 %v5401_v1 }
0x1bbd   :  { %v3718_v31 = vpop.f32.mrf.mxu1 }
0x1bbf   :  { %v5166_v32 = vpop.f32.mrf.mxu1 }
0x1bc0   :  { %v4688_v32 = vld [vmem:[%s6302_s17 + $0x38] sm:$0xff] }
0x1c4d   :  { %v3879_v33 = vpop.f32.mrf.mxu1 }
0x1c4e   :  { %v3961_v34 = vmul.f32 %v3879_v33, %v5715_v48  ;;  %v4686_v33 = vld [vmem:[%s6302_s17 + $0x28] sm:$0xff] }
0x1c4f   :  { %v5176_v35 = vpop.f32.mrf.mxu1 }
0x1c50   :  { %v3963_v56 = vsel %vm464_vm6, %v3961_v34, -inf }
0x1c51   :  { %3964 = vmax.xlane.f32.xlu0 %v3963_v56 }
0x1c55   :  { %v3642_v37 = vpop.f32.mrf.mxu0 }
0x1c56   :  { %5169 = vmatprep.mubr.msk.f32.mxu0 %vm464_vm6, %v3642_v37 }
0x1c57   :  { %v5161_v39 = vpop.f32.mrf.mxu0  ;;  %5170 = vmatmul.mubr.msk.f32.vlgmr.msra.gmra.mxu0 %vm464_vm6, %v3718_v31 }
0x1c58   :  { %5178 = vmatpush3.xpose.msk.msra.mxu0 %vm464_vm6, %v3886_v36  ;;  %5179 = vmatprep.mubr.msk.f32.mxu0 %vm5402_vm0, %v5401_v1 }
0x1c59   :  { %5187 = vmatprep.subr.mxu0 %v5401_v1 }
0x1c5b   :  { %5180 = vmatmul.mubr.msk.f32.vlgmr.msra.gmra.mxu0 %vm464_vm6, %v3884_v42 }
0x1c5c   :  { %5189 = vmatprep.mubr.msk.f32.mxu0 %vm5402_vm0, %v5401_v1 }
0x1cda   :  { %v3965_v48 = vpop.xlane.xlu0 %3964 }
0x1cdb   :  { %v3969_v44 = vsub.f32 %v3961_v34, %v3965_v48  ;;  %v4685_v34 = vld [vmem:[%s6302_s17 + $0x20] sm:$0xff] }
0x1cdd   :  { %v3971_v45 = vmul.f32 1.442695, %v3969_v44 }
0x1cdf   :  { %5351 = vpow2.f32 %v3971_v45 }
0x1cec   :  { %v5352_v46 = vpop.eup %5351 }
0x1ced   :  { %v3975_v47 = vsel %vm464_vm6, %v5352_v46, 0.0 }
0x1cee   :  { %3976 = vadd.xlane.f32.xlu0 %v3975_v47 }
0x1d17   :  { %v5171_v50 = vpop.f32.mrf.mxu0 }
0x1d18   :  { %v3804_v52 = vadd.f32 %v5171_v50, %v3387_v49 }
0x1d19   :  { %v3794_v54 = vpop.f32.mrf.mxu0 }
0x1d1a   :  { %v3803_v55 = vadd.f32 %v3794_v54, %v3382_v51 }
0x1d1b   :  { %v3957_v58 = vpop.f32.mrf.mxu0 }
0x1d1c   :  { %v3962_v1 = vmul.f32 %v3957_v58, %v5719_v53 }
0x1d1d   :  { %v5181_v63 = vpop.f32.mrf.mxu0 }
0x1d1e   :  { %v3966_v0 = vsel %vm464_vm6, %v3962_v1, -inf }
0x1d1f   :  { %3967 = vmax.xlane.f32.xlu1 %v3966_v0 }
0x1d30   :  { %4061 = vrot.lane.b32.xlu1 %v6005_v38, %s6338_s28 }
0x1d77   :  { %v3977_v53 = vpop.xlane.xlu0 %3976 }
0x1da8   :  { %v3968_v2 = vpop.xlane.xlu1 %3967 }
0x1da9   :  { %v3970_v25 = vsub.f32 %v3962_v1, %v3968_v2  ;;  %v4683_v1 = vld [vmem:[%s6300_s15 + $0x1] ss:$0 sm:$0xff] }
0x1dab   :  { %v3973_v61 = vmul.f32 1.442695, %v3970_v25  ;;  %v4684_v25 = vld [vmem:[%s6301_s16 + $0x1] ss:$0 sm:$0xff] }
0x1dac   :  { %v4062_v3 = vpop.permute.xlu1 %4061 }
0x1dad   :  { %5353 = vpow2.f32 %v3973_v61  ;;  %5188 = vmatpush3.msra.mxu0 %v4062_v3 }
0x1dae   :  { %5355 = vrcp.f32 %v3977_v53  ;;  %5197 = vmatprep.subr.mxu0 %v4688_v32  ;;  %v4707_v53 = vld [vmem:[%s6304_s19 + $0xf0] sm:$0xff] }
0x1dba   :  { %v5354_v62 = vpop.eup %5353 }
0x1dbb   :  { %v3978_v4 = vsel %vm464_vm6, %v5354_v62, 0.0  ;;  %v5356_v27 = vpop.eup %5355 }
0x1dbc   :  { %3979 = vadd.xlane.f32.xlu0 %v3978_v4  ;;  %v3982_v38 = vmul.f32 %v5356_v27, %v5352_v46  ;;  %v4708_v4 = vld [vmem:[%s6304_s19 + $0xf8] sm:$0xff]  ;;  %v4705_v27 = vld [vmem:[%s6304_s19 + $0xe0] sm:$0xff] }
0x1dd2   :  { %3985 = vrot.lane.b32.xlu0 %v6007_v40, %s6338_s28 }
0x1e45   :  { %v3980_v5 = vpop.xlane.xlu0 %3979 }
0x1e46   :  { %5357 = vrcp.f32 %v3980_v5  ;;  %v4706_v5 = vld [vmem:[%s6304_s19 + $0xe8] sm:$0xff] }
0x1e49   :  { %v3986_v6 = vpop.permute.xlu0 %3985 }
0x1e4a   :  { %5183 = vmatpush3.msra.mxu1 %v3986_v6  ;;  %v4704_v6 = vld [vmem:[%s6304_s19 + $0xd8] sm:$0xff] }
0x1e4b   :  { %5185 = vmatmul.mubr.msk.f32.vlgmr.msra.gmra.mxu1 %vm464_vm6, %v3982_v38  ;;  %5192 = vmatprep.subr.mxu1 %v4646_v9  ;;  %v4703_v38 = vld [vmem:[%s6304_s19 + $0xd0] sm:$0xff] }
0x1e4c   :  { %5193 = vmatpush3.msra.mxu1 %v4646_v9  ;;  %v4700_v9 = vld [vmem:[%s6304_s19 + $0xb8] sm:$0xff] }
0x1e4d   :  { %5208 = vmatprep.subr.mxu1 %v4708_v4 }
0x1e53   :  { %v5358_v7 = vpop.eup %5357 }
0x1e54   :  { %v3984_v8 = vmul.f32 %v5358_v7, %v5354_v62  ;;  %v4702_v7 = vld [vmem:[%s6304_s19 + $0xc8] sm:$0xff] }
0x1e56   :  { %5190 = vmatmul.mubr.msk.f32.vlgmr.msra.gmra.mxu0 %vm464_vm6, %v3984_v8  ;;  %v4701_v8 = vld [vmem:[%s6304_s19 + $0xc0] sm:$0xff] }
0x1e57   :  { %5198 = vmatpush3.msra.mxu0 %v4688_v32 }
0x1e58   :  { %5199 = vmatprep.subr.mxu0 %v4687_v59 }
0x1e59   :  { %5200 = vmatpush3.msra.mxu0 %v4687_v59 }
0x1e5a   :  { %5201 = vmatprep.subr.mxu0 %v4686_v33 }
0x1e5b   :  { %5202 = vmatpush3.msra.mxu0 %v4686_v33 }
0x1e5c   :  { %5203 = vmatprep.subr.mxu0 %v4685_v34 }
0x1e5d   :  { %5204 = vmatpush3.msra.mxu0 %v4685_v34 }
0x1f0b   :  { %v4057_v40 = vpop.f32.mrf.mxu1 }
0x1f0c   :  { %5194 = vmatprep.mubr.msk.f32.mxu1 %vm464_vm6, %v4057_v40  ;;  %v4699_v40 = vld [vmem:[%s6304_s19 + $0xb0] sm:$0xff] }
0x1f0d   :  { %v5186_v10 = vpop.f32.mrf.mxu1 }
0x1f0e   :  { %v4698_v10 = vld [vmem:[%s6304_s19 + $0xa8] sm:$0xff] }
0x1f16   :  { %v4133_v11 = vpop.f32.mrf.mxu0 }
0x1f17   :  { %5195 = vmatmul.mubr.msk.f32.vlgmr.msra.gmra.mxu1 %vm464_vm6, %v4133_v11  ;;  %v4697_v11 = vld [vmem:[%s6304_s19 + $0xa0] sm:$0xff] }
0x1f18   :  { %v5191_v12 = vpop.f32.mrf.mxu0  ;;  %5209 = vmatpush3.msra.mxu1 %v4708_v4 }
0x1f19   :  { %5210 = vmatprep.subr.mxu1 %v4707_v53  ;;  %v4696_v12 = vld [vmem:[%s6304_s19 + $0x98] sm:$0xff] }
0x1f1a   :  { %5211 = vmatpush3.msra.mxu1 %v4707_v53 }
0x1f1b   :  { %5212 = vmatprep.subr.mxu1 %v4706_v5 }
0x1f1c   :  { %5213 = vmatpush3.msra.mxu1 %v4706_v5 }
0x1f1d   :  { %5214 = vmatprep.subr.mxu1 %v4705_v27 }
0x1f1e   :  { %5215 = vmatpush3.msra.mxu1 %v4705_v27 }
0x1f1f   :  { %5216 = vmatprep.subr.mxu1 %v4704_v6 }
0x1f20   :  { %5217 = vmatpush3.msra.mxu1 %v4704_v6 }
0x1f21   :  { %5218 = vmatprep.subr.mxu1 %v4703_v38 }
0x1f22   :  { %5219 = vmatpush3.msra.mxu1 %v4703_v38 }
0x1f23   :  { %5220 = vmatprep.subr.mxu1 %v4702_v7 }
0x1f24   :  { %5221 = vmatpush3.msra.mxu1 %v4702_v7 }
0x1f25   :  { %5222 = vmatprep.subr.mxu1 %v4701_v8 }
0x1f26   :  { %5223 = vmatpush3.msra.mxu1 %v4701_v8 }
0x1f27   :  { %5224 = vmatprep.subr.mxu1 %v4700_v9 }
0x1f28   :  { %5225 = vmatpush3.msra.mxu1 %v4700_v9 }
0x1f29   :  { %5226 = vmatprep.subr.mxu1 %v4699_v40 }
0x1f2a   :  { %5227 = vmatpush3.msra.mxu1 %v4699_v40 }
0x1f2b   :  { %5228 = vmatprep.subr.mxu1 %v4698_v10 }
0x1f2c   :  { %5229 = vmatpush3.msra.mxu1 %v4698_v10 }
0x1f2d   :  { %5230 = vmatprep.subr.mxu1 %v4697_v11 }
0x1f2e   :  { %5231 = vmatpush3.msra.mxu1 %v4697_v11  ;;  %v4711_v11 = vld [vmem:[%s6306_s21] ss:$0 sm:$0xff] }
0x1f2f   :  { %5232 = vmatprep.subr.mxu1 %v4696_v12 }
0x1f30   :  { %5233 = vmatpush3.msra.mxu1 %v4696_v12 }
0x1fd7   :  { %v5196_v41 = vpop.f32.mrf.mxu1 }
0x1fd8   :  { %v4219_v13 = vadd.f32 %v5196_v41, %v3804_v52  ;;  %v4695_v41 = vld [vmem:[%s6304_s19 + $0x90] sm:$0xff] }
0x1fd9   :  { %v4209_v15 = vpop.f32.mrf.mxu1  ;;  %5234 = vmatprep.subr.mxu1 %v4695_v41 }
0x1fda   :  { %v4221_v43 = vadd.f32 %v4219_v13, %v5966_v57  ;;  %v4218_v16 = vadd.f32 %v4209_v15, %v3803_v55  ;;  %v4694_v13 = vld [vmem:[%s6304_s19 + $0x88] sm:$0xff]  ;;  %5235 = vmatpush3.msra.mxu1 %v4695_v41  ;;  %v4690_v15 = vld [vmem:[%s6303_s18 + $0x1] ss:$0 sm:$0xff]  ;;  %v4712_v41 = vld [vmem:[%s6307_s22] ss:$0 sm:$0xff] }
0x1fdb   :  { %5236 = vmatprep.subr.mxu1 %v4694_v13 }
0x1fdc   :  { %v6181_v17 = vadd.f32 %v4680_v14, %v4221_v43  ;;  %v4220_v18 = vadd.f32 %v4218_v16, %v5969_v60  ;;  %5237 = vmatpush3.msra.mxu1 %v4694_v13 }
0x1fde   :  { %v6184_v19 = vadd.f32 %v4680_v14, %v4220_v18  ;;  %v4239_v20 = vsel %vm87_vm1, %v6181_v17, 0.0  ;;  %v4693_v14 = vld [vmem:[%s6304_s19 + $0x80] sm:$0xff] }
0x1fdf   :  { %4240 = vadd.xlane.f32.xlu0 %v4239_v20  ;;  %5238 = vmatprep.subr.mxu1 %v4693_v14 }
0x1fe0   :  { %v4236_v21 = vsel %vm87_vm1, %v6184_v19, 0.0  ;;  %5239 = vmatpush3.msra.mxu1 %v4693_v14 }
0x1fe1   :  { %4237 = vadd.xlane.f32.xlu1 %v4236_v21 }
0x2068   :  { %v4241_v22 = vpop.xlane.xlu0 %4240 }
0x2069   :  { %v4243_v23 = vmul.f32 0.03125, %v4241_v22 }
0x206a   :  { %v4238_v24 = vpop.xlane.xlu1 %4237 }
0x206b   :  { %v4245_v57 = vsub.f32 %v6181_v17, %v4243_v23  ;;  %v4242_v26 = vmul.f32 0.03125, %v4238_v24 }
0x206d   :  { %v4244_v28 = vsub.f32 %v6184_v19, %v4242_v26  ;;  %v4247_v29 = vmul.f32 %v4245_v57, %v4245_v57 }
0x206f   :  { %v4251_v60 = vsel %vm87_vm1, %v4247_v29, 0.0  ;;  %v4246_v30 = vmul.f32 %v4244_v28, %v4244_v28 }
0x2070   :  { %4252 = vadd.xlane.f32.xlu1 %v4251_v60 }
0x2071   :  { %v4248_v31 = vsel %vm87_vm1, %v4246_v30, 0.0 }
0x2072   :  { %4249 = vadd.xlane.f32.xlu0 %v4248_v31 }
0x20f9   :  { %v4253_v35 = vpop.xlane.xlu1 %4252 }
0x20fa   :  { %v4255_v56 = vmul.f32 0.03125, %v4253_v35 }
0x20fb   :  { %v4250_v36 = vpop.xlane.xlu0 %4249 }
0x20fc   :  { %v4257_v37 = vadd.f32 1e-12, %v4255_v56  ;;  %v4254_v39 = vmul.f32 0.03125, %v4250_v36 }
0x20fe   :  { %5359 = vrsqrt.f32 %v4257_v37  ;;  %v4256_v42 = vadd.f32 1e-12, %v4254_v39  ;;  %vm4267_vm15 = vcmp.eq.f32.partialorder %v4257_v37, inf  ;;  %v4270_v45 = vand.u32 2147483648, %v4257_v37  ;;  %v4710_v39 = vld [vmem:[%s6305_s20 + $0x1] ss:$0 sm:$0xff] }
0x20ff   :  { %vm4269_vm0 = vcmp.eq.f32.partialorder %v4257_v37, 0.0 }
0x2100   :  { %5361 = vrsqrt.f32 %v4256_v42  ;;  %vm4260_vm2 = vcmp.eq.f32.partialorder %v4256_v42, inf  ;;  %v4263_v51 = vand.u32 2147483648, %v4256_v42  ;;  %vm4262_vm3 = vcmp.eq.f32.partialorder %v4256_v42, 0.0 }
0x210b   :  { %v5360_v48 = vpop.eup %5359 }
0x210c   :  { %v4266_v44 = vmul.f32 %v5360_v48, %v4257_v37 }
0x210d   :  { %v5362_v46 = vpop.eup %5361 }
0x210e   :  { %v4268_v47 = vsel %vm4267_vm15, %v4257_v37, %v4266_v44  ;;  %v4259_v50 = vmul.f32 %v5362_v46, %v4256_v42 }
0x210f   :  { %v4271_v49 = vsel %vm4269_vm0, %v4270_v45, %v4268_v47 }
0x2110   :  { %5363 = vrcp.f32 %v4271_v49  ;;  %v4261_v52 = vsel %vm4260_vm2, %v4256_v42, %v4259_v50 }
0x2111   :  { %v4264_v54 = vsel %vm4262_vm3, %v4263_v51, %v4261_v52 }
0x2112   :  { %5365 = vrcp.f32 %v4264_v54 }
0x211d   :  { %v5364_v55 = vpop.eup %5363 }
0x211e   :  { %v4275_v58 = vmul.f32 %v5364_v55, %v4245_v57 }
0x211f   :  { %v5366_v63 = vpop.eup %5365 }
0x2120   :  { %v4273_v0 = vmul.f32 %v5366_v63, %v4244_v28  ;;  %v4283_v2 = vmul.f32 %v4683_v1, %v4275_v58 }
0x2122   :  { %v4282_v61 = vmul.f32 %v4683_v1, %v4273_v0  ;;  %v4291_v62 = vadd.f32 %v4684_v25, %v4283_v2 }
0x2124   :  { %v4290_v3 = vadd.f32 %v4684_v25, %v4282_v61 }
0x2126   :  { %5205 = vmatprep.mubr.msk.f32.mxu0 %vm87_vm1, %v4290_v3 }
0x2127   :  { %5206 = vmatmul.mubr.msk.f32.vlgmr.msra.gmra.mxu0 %vm87_vm1, %v4291_v62 }
0x21e7   :  { %v5207_v43 = vpop.f32.mrf.mxu0 }
0x21e8   :  { %v4383_v16 = vadd.f32 %v5207_v43, %v4690_v15 }
0x21e9   :  { %v4377_v18 = vpop.f32.mrf.mxu0 }
0x21ea   :  { %v4389_v20 = vmul.f32 0.044715, %v4383_v16  ;;  %v4378_v21 = vadd.f32 %v4690_v15, %v4377_v18  ;;  %v4387_v35 = vmul.f32 0.5, %v4383_v16 }
0x21ec   :  { %v4391_v22 = vmul.f32 %v4389_v20, %v4383_v16  ;;  %v4388_v23 = vmul.f32 0.044715, %v4378_v21  ;;  %v4386_v33 = vmul.f32 0.5, %v4378_v21 }
0x21ee   :  { %v4393_v24 = vmul.f32 %v4391_v22, %v4383_v16  ;;  %v4390_v57 = vmul.f32 %v4388_v23, %v4378_v21 }
0x21f0   :  { %v4395_v26 = vadd.f32 %v4393_v24, %v4383_v16  ;;  %v4392_v28 = vmul.f32 %v4390_v57, %v4378_v21 }
0x21f2   :  { %v4394_v29 = vadd.f32 %v4392_v28, %v4378_v21  ;;  %v4397_v60 = vmul.f32 0.7978846, %v4395_v26 }
0x21f4   :  { %v4396_v30 = vmul.f32 0.7978846, %v4394_v29  ;;  %5367 = vtanh.f32 %v4397_v60 }
0x21f6   :  { %5369 = vtanh.f32 %v4396_v30 }
0x2201   :  { %v5368_v31 = vpop.eup %5367 }
0x2202   :  { %v4401_v59 = vadd.f32 1.0, %v5368_v31 }
0x2203   :  { %v5370_v32 = vpop.eup %5369 }
0x2204   :  { %v4400_v34 = vadd.f32 1.0, %v5370_v32  ;;  %v4403_v36 = vmul.f32 %v4401_v59, %v4387_v35 }
0x2206   :  { %v4402_v56 = vmul.f32 %v4400_v34, %v4386_v33 }
0x2208   :  { %5240 = vmatprep.mubr.f32.mxu1 %v4402_v56 }
0x2209   :  { %5241 = vmatmul.mubr.f32.vlgmr.msra.gmra.mxu1 %v4403_v36 }
0x22c9   :  { %v5242_v37 = vpop.f32.mrf.mxu1 }
0x22ca   :  { %v4497_v42 = vadd.f32 %v5242_v37, %v6181_v17 }
0x22cb   :  { %v4487_v48 = vpop.f32.mrf.mxu1 }
0x22cc   :  { %v4496_v44 = vadd.f32 %v4487_v48, %v6184_v19  ;;  %v4507_v45 = vadd.f32 %v4710_v39, %v4497_v42 }
0x22ce   :  { %v4513_v46 = vsel %vm87_vm1, %v4507_v45, 0.0  ;;  %v4506_v47 = vadd.f32 %v4710_v39, %v4496_v44 }
0x22cf   :  { %4514 = vadd.xlane.f32.xlu1 %v4513_v46 }
0x22d0   :  { %v4510_v49 = vsel %vm87_vm1, %v4506_v47, 0.0 }
0x22d1   :  { %4511 = vadd.xlane.f32.xlu0 %v4510_v49 }
0x2358   :  { %v4515_v50 = vpop.xlane.xlu1 %4514 }
0x2359   :  { %v4517_v51 = vmul.f32 0.03125, %v4515_v50 }
0x235a   :  { %v4512_v52 = vpop.xlane.xlu0 %4511 }
0x235b   :  { %v4519_v54 = vsub.f32 %v4507_v45, %v4517_v51  ;;  %v4516_v55 = vmul.f32 0.03125, %v4512_v52 }
0x235d   :  { %v4518_v58 = vsub.f32 %v4506_v47, %v4516_v55  ;;  %v4521_v1 = vmul.f32 %v4519_v54, %v4519_v54 }
0x235f   :  { %v4525_v17 = vsel %vm87_vm1, %v4521_v1, 0.0  ;;  %v4520_v63 = vmul.f32 %v4518_v58, %v4518_v58 }
0x2360   :  { %4526 = vadd.xlane.f32.xlu1 %v4525_v17 }
0x2361   :  { %v4522_v19 = vsel %vm87_vm1, %v4520_v63, 0.0 }
0x2362   :  { %4523 = vadd.xlane.f32.xlu0 %v4522_v19 }
0x23e9   :  { %v4527_v0 = vpop.xlane.xlu1 %4526 }
0x23ea   :  { %v4529_v2 = vmul.f32 0.03125, %v4527_v0 }
0x23eb   :  { %v4524_v25 = vpop.xlane.xlu0 %4523 }
0x23ec   :  { %v4531_v61 = vadd.f32 1e-12, %v4529_v2  ;;  %v4528_v3 = vmul.f32 0.03125, %v4524_v25 }
0x23ee   :  { %5371 = vrsqrt.f32 %v4531_v61  ;;  %v4530_v62 = vadd.f32 1e-12, %v4528_v3  ;;  %vm4541_vm4 = vcmp.eq.f32.partialorder %v4531_v61, inf  ;;  %v4544_v5 = vand.u32 2147483648, %v4531_v61 }
0x23ef   :  { %vm4543_vm5 = vcmp.eq.f32.partialorder %v4531_v61, 0.0 }
0x23f0   :  { %5373 = vrsqrt.f32 %v4530_v62  ;;  %vm4534_vm6 = vcmp.eq.f32.partialorder %v4530_v62, inf  ;;  %v4537_v8 = vand.u32 2147483648, %v4530_v62  ;;  %vm4536_vm7 = vcmp.eq.f32.partialorder %v4530_v62, 0.0 }
0x23fb   :  { %v5372_v4 = vpop.eup %5371 }
0x23fc   :  { %v4540_v53 = vmul.f32 %v5372_v4, %v4531_v61 }
0x23fd   :  { %v5374_v27 = vpop.eup %5373 }
0x23fe   :  { %v4542_v6 = vsel %vm4541_vm4, %v4531_v61, %v4540_v53  ;;  %v4533_v7 = vmul.f32 %v5374_v27, %v4530_v62 }
0x23ff   :  { %v4545_v38 = vsel %vm4543_vm5, %v4544_v5, %v4542_v6 }
0x2400   :  { %5375 = vrcp.f32 %v4545_v38  ;;  %v4535_v9 = vsel %vm4534_vm6, %v4530_v62, %v4533_v7 }
0x2401   :  { %v4538_v40 = vsel %vm4536_vm7, %v4537_v8, %v4535_v9 }
0x2402   :  { %5377 = vrcp.f32 %v4538_v40 }
0x240d   :  { %v5376_v10 = vpop.eup %5375 }
0x240e   :  { %v4549_v12 = vmul.f32 %v5376_v10, %v4519_v54 }
0x240f   :  { %v5378_v13 = vpop.eup %5377 }
0x2410   :  { %v4557_v14 = vmul.f32 %v4711_v11, %v4549_v12  ;;  %v4547_v15 = vmul.f32 %v5378_v13, %v4518_v58 }
0x2412   :  { %v4565_v43 = vadd.f32 %v4712_v41, %v4557_v14  ;;  %v4556_v16 = vmul.f32 %v4711_v11, %v4547_v15 }
0x2414   :  { %4567 = vst.msk [vmem:[#allocation2 + $0x8] sm:$0xff] %vm87_vm1, %v4565_v43  ;;  %v4564_v18 = vadd.f32 %v4712_v41, %v4556_v16 }
0x2416   :  { %4566 = vst.msk [vmem:[#allocation2] sm:$0xff] %vm87_vm1, %v4564_v18 }
0x2417   :  { %5390 = shalt.err (!%p5387_p4)
}
0x2418   :  { %s5417_s21 = smov 128   ;;  %s5418_s22 = smov 8  }
0x2419   :  { %4579 = dma.vmem_to_hbm [thread:$0]  %s4574_s13, 256, %s6308_s23, [#allocation3], %s5417_s21, %s5417_s21, %s5418_s22  }
0x241a   :  { %5399 = dma.done.wait [#allocation3], 256  }
0x241b   :  { %5400 = vsyncadd [#allocation3], 4294967040 }
0x241c   :  { %4583 = vsyncpa [#allocation3], 1 }

</bundles_post_ra>
